<compile_context>
chip_gen: v6e
topology: v6e:2x2x1
jax: 0.10.0
libtpu: 0.0.40
codegen_flags: <defaults>
</compile_context>

<pallas_src>
import math

import jax
import jax.numpy as jnp
from jax.experimental import pallas as pl
from jax.experimental.pallas import tpu as pltpu

# out_features of each nn.Linear in the PyTorch module.
_WIDTHS = [64, 128, 256, 512, 256, 128, 64, 32, 16, 1]
_N_LAYERS = len(_WIDTHS)
_LANE = 128
# Every width padded up to a multiple of 128 lanes (min 128).
_PADDED = [max(_LANE, ((w + _LANE - 1) // _LANE) * _LANE) for w in _WIDTHS]
_MAX_PAD = max(_PADDED)


def _battery_kernel(x_ref, *refs):
    """refs = (w1..w10 [bf16, lane-padded], bias_packed [f32 (10, 512)], out_ref)."""
    w_refs = refs[:_N_LAYERS]
    b_ref = refs[_N_LAYERS]
    out_ref = refs[_N_LAYERS + 1]

    h = x_ref[...]                                      # (TB, in_features) f32
    for i, width in enumerate(_PADDED):
        # bf16 operands into the MXU, f32 accumulation.
        acc = jnp.dot(h.astype(jnp.bfloat16), w_refs[i][...],
                      preferred_element_type=jnp.float32)
        acc = acc + b_ref[i:i + 1, :width]              # (1, width) f32 bias row
        h = jnp.tanh(acc) if i < _N_LAYERS - 1 else acc  # no activation on head
    # True output lives in lane 0 of the padded head result.
    out_ref[...] = h[:, :_WIDTHS[-1]].astype(out_ref.dtype)


def battery_predictor(x, weights_bf16, bias_packed, *, block_batch=256):
    """x: (B, input_len) f32; weights_bf16[i]: (in_padded, out_padded) bf16
    (transposed + zero-padded vs. PyTorch); bias_packed: (10, 512) f32."""
    batch, in_feat = x.shape
    tb = min(block_batch, batch)
    # Keep tiles a multiple of 8 sublanes (or equal to the full batch).
    if tb != batch and tb % 8 != 0:
        tb = max(8, (tb // 8) * 8)
    pad = (-batch) % tb
    if pad:
        x = jnp.pad(x, ((0, pad), (0, 0)))
    padded_batch = batch + pad
    grid = (padded_batch // tb,)

    x_spec = pl.BlockSpec((tb, in_feat), lambda i: (i, 0))
    # Parameters: full-array blocks with a constant block index -> loaded once,
    # VMEM-resident across the whole batch grid.
    w_specs = [pl.BlockSpec(w.shape, lambda i: (0, 0)) for w in weights_bf16]
    b_spec = pl.BlockSpec(bias_packed.shape, lambda i: (0, 0))
    out_spec = pl.BlockSpec((tb, _WIDTHS[-1]), lambda i: (i, 0))

    # Advisory cost estimate for the XLA scheduler.
    dims = [in_feat] + _PADDED
    macs_per_row = sum(dims[i] * dims[i + 1] for i in range(_N_LAYERS))
    flops = 2 * padded_batch * macs_per_row
    transcendentals = padded_batch * sum(_PADDED[:-1])
    bytes_accessed = (x.size * x.dtype.itemsize
                      + sum(w.size * w.dtype.itemsize for w in weights_bf16)
                      + bias_packed.size * bias_packed.dtype.itemsize
                      + padded_batch * _WIDTHS[-1] * 4)

    out = pl.pallas_call(
        _battery_kernel,
        out_shape=jax.ShapeDtypeStruct((padded_batch, _WIDTHS[-1]), jnp.float32),
        grid=grid,
        in_specs=[x_spec] + w_specs + [b_spec],
        out_specs=out_spec,
        compiler_params=pltpu.CompilerParams(
            dimension_semantics=("parallel",)),      # megacore sharding on v7x
        cost_estimate=pl.CostEstimate(flops=flops,
                                      transcendentals=transcendentals,
                                      bytes_accessed=bytes_accessed),
    )(x, *weights_bf16, bias_packed)
    return out[:batch]


def init_params(input_len, key):
    """nn.Linear-style U(-1/sqrt(fan_in), 1/sqrt(fan_in)) init (f32 masters,
    weights stored (in, out) i.e. transposed vs. PyTorch)."""
    weights, biases = [], []
    fan_in = input_len
    for out_features in _WIDTHS:
        key, kw, kb = jax.random.split(key, 3)
        bound = 1.0 / math.sqrt(fan_in)
        w = jax.random.uniform(kw, (fan_in, out_features), jnp.float32,
                               minval=-bound, maxval=bound)
        b = jax.random.uniform(kb, (1, out_features), jnp.float32,
                               minval=-bound, maxval=bound)
        weights.append(w)
        biases.append(b)
        fan_in = out_features
    return weights, biases


def pad_and_cast_params(weights_f32, biases):
    """Zero-pad every layer to the lane-aligned widths, cast weights to bf16,
    and pack the 10 bias rows into one (10, 512) f32 array."""
    w_bf16, rows = [], []
    prev = weights_f32[0].shape[0]            # input_len (left unpadded)
    for i, (w, b) in enumerate(zip(weights_f32, biases)):
        fan_in, fan_out = w.shape
        wp = jnp.zeros((prev, _PADDED[i]), jnp.float32)
        wp = wp.at[:fan_in, :fan_out].set(w)
        w_bf16.append(wp.astype(jnp.bfloat16))
        rows.append(jnp.zeros((_MAX_PAD,), jnp.float32).at[:fan_out].set(
            b.reshape(-1)))
        prev = _PADDED[i]
    return w_bf16, jnp.stack(rows, axis=0)


def reference_forward(x, weights_f32, biases):
    """Pure-JAX reference with the same bf16-operand / f32-accum numerics
    (unpadded weights — the zero padding contributes exactly nothing)."""
    h = x
    for i in range(_N_LAYERS):
        w = weights_f32[i].astype(jnp.bfloat16)
        h = jnp.dot(h.astype(jnp.bfloat16), w,
                    preferred_element_type=jnp.float32) + biases[i]
        if i < _N_LAYERS - 1:
            h = jnp.tanh(h)
    return h


if __name__ == "__main__":
    key = jax.random.PRNGKey(0)
    key, kx, kp = jax.random.split(key, 3)

    batch = 64                      # small demo batch; grid tiles it by 32
    input_len = 16                  # EIS feature vector length (small synthetic)
    x = jax.random.normal(kx, (batch, input_len), jnp.float32)

    weights_f32, biases = init_params(input_len, kp)
    weights_bf16, bias_packed = pad_and_cast_params(weights_f32, biases)

    out = battery_predictor(x, weights_bf16, bias_packed, block_batch=32)
    out = jax.block_until_ready(out)

    ref = reference_forward(x, weights_f32, biases)
    assert out.shape == (batch, 1), out.shape
    max_err = float(jnp.max(jnp.abs(out - ref)))
    assert jnp.allclose(out, ref, atol=1e-3, rtol=1e-3), f"max err {max_err}"

    print("KERNEL_OK")
</pallas_src>

<mosaic_0001>
module attributes {stable_mosaic.version = 11 : i64} {
  func.func @_battery_kernel(%arg0: i32, %arg1: memref<32x16xf32, #tpu.memory_space<vmem>>, %arg2: memref<16x128xbf16, #tpu.memory_space<vmem>>, %arg3: memref<128x128xbf16, #tpu.memory_space<vmem>>, %arg4: memref<128x256xbf16, #tpu.memory_space<vmem>>, %arg5: memref<256x512xbf16, #tpu.memory_space<vmem>>, %arg6: memref<512x256xbf16, #tpu.memory_space<vmem>>, %arg7: memref<256x128xbf16, #tpu.memory_space<vmem>>, %arg8: memref<128x128xbf16, #tpu.memory_space<vmem>>, %arg9: memref<128x128xbf16, #tpu.memory_space<vmem>>, %arg10: memref<128x128xbf16, #tpu.memory_space<vmem>>, %arg11: memref<128x128xbf16, #tpu.memory_space<vmem>>, %arg12: memref<10x512xf32, #tpu.memory_space<vmem>>, %arg13: memref<32x1xf32, #tpu.memory_space<vmem>>) attributes {dimension_semantics = [#tpu.dimension_semantics<parallel>], iteration_bounds = array<i64: 2>, scalar_prefetch = 0 : i64, scratch_operands = 0 : i64, tpu.core_type = #tpu.core_type<tc>, window_params = [{transform_indices = @transform_0, window_bounds = array<i64: 32, 16>}, {pipeline_mode = #tpu.pipeline_mode<synchronous>, transform_indices = @transform_1, window_bounds = array<i64: 16, 128>}, {pipeline_mode = #tpu.pipeline_mode<synchronous>, transform_indices = @transform_2, window_bounds = array<i64: 128, 128>}, {pipeline_mode = #tpu.pipeline_mode<synchronous>, transform_indices = @transform_3, window_bounds = array<i64: 128, 256>}, {pipeline_mode = #tpu.pipeline_mode<synchronous>, transform_indices = @transform_4, window_bounds = array<i64: 256, 512>}, {pipeline_mode = #tpu.pipeline_mode<synchronous>, transform_indices = @transform_5, window_bounds = array<i64: 512, 256>}, {pipeline_mode = #tpu.pipeline_mode<synchronous>, transform_indices = @transform_6, window_bounds = array<i64: 256, 128>}, {pipeline_mode = #tpu.pipeline_mode<synchronous>, transform_indices = @transform_7, window_bounds = array<i64: 128, 128>}, {pipeline_mode = #tpu.pipeline_mode<synchronous>, transform_indices = @transform_8, window_bounds = array<i64: 128, 128>}, {pipeline_mode = #tpu.pipeline_mode<synchronous>, transform_indices = @transform_9, window_bounds = array<i64: 128, 128>}, {pipeline_mode = #tpu.pipeline_mode<synchronous>, transform_indices = @transform_10, window_bounds = array<i64: 128, 128>}, {pipeline_mode = #tpu.pipeline_mode<synchronous>, transform_indices = @transform_11, window_bounds = array<i64: 10, 512>}, {transform_indices = @transform_12, window_bounds = array<i64: 32, 1>}]} {
    %c0 = arith.constant 0 : index
    %c0_0 = arith.constant 0 : index
    %0 = vector.load %arg1[%c0, %c0_0] : memref<32x16xf32, #tpu.memory_space<vmem>>, vector<32x16xf32>
    %1 = arith.truncf %0 : vector<32x16xf32> to vector<32x16xbf16>
    %c0_1 = arith.constant 0 : index
    %c0_2 = arith.constant 0 : index
    %2 = vector.load %arg2[%c0_1, %c0_2] : memref<16x128xbf16, #tpu.memory_space<vmem>>, vector<16x128xbf16>
    %cst = arith.constant dense<0.000000e+00> : vector<32x128xf32>
    %3 = tpu.matmul %1, %2, %cst {dimension_numbers = #tpu.dot_dimension_numbers<[1], [0], [0], [1], [0, 0, 1, 1], [], []>} : vector<32x16xbf16>, vector<16x128xbf16>, vector<32x128xf32> -> vector<32x128xf32>
    %c0_3 = arith.constant 0 : index
    %c0_4 = arith.constant 0 : index
    %4 = vector.load %arg12[%c0_3, %c0_4] : memref<10x512xf32, #tpu.memory_space<vmem>>, vector<1x128xf32>
    %5 = vector.broadcast %4 : vector<1x128xf32> to vector<32x128xf32>
    %6 = arith.addf %3, %5 : vector<32x128xf32>
    %7 = math.tanh %6 : vector<32x128xf32>
    %8 = arith.truncf %7 : vector<32x128xf32> to vector<32x128xbf16>
    %c0_5 = arith.constant 0 : index
    %c0_6 = arith.constant 0 : index
    %9 = vector.load %arg3[%c0_5, %c0_6] : memref<128x128xbf16, #tpu.memory_space<vmem>>, vector<128x128xbf16>
    %cst_7 = arith.constant dense<0.000000e+00> : vector<32x128xf32>
    %10 = tpu.matmul %8, %9, %cst_7 {dimension_numbers = #tpu.dot_dimension_numbers<[1], [0], [0], [1], [0, 0, 1, 1], [], []>} : vector<32x128xbf16>, vector<128x128xbf16>, vector<32x128xf32> -> vector<32x128xf32>
    %c1 = arith.constant 1 : index
    %c0_8 = arith.constant 0 : index
    %11 = vector.load %arg12[%c1, %c0_8] : memref<10x512xf32, #tpu.memory_space<vmem>>, vector<1x128xf32>
    %12 = vector.broadcast %11 : vector<1x128xf32> to vector<32x128xf32>
    %13 = arith.addf %10, %12 : vector<32x128xf32>
    %14 = math.tanh %13 : vector<32x128xf32>
    %15 = arith.truncf %14 : vector<32x128xf32> to vector<32x128xbf16>
    %c0_9 = arith.constant 0 : index
    %c0_10 = arith.constant 0 : index
    %16 = vector.load %arg4[%c0_9, %c0_10] : memref<128x256xbf16, #tpu.memory_space<vmem>>, vector<128x256xbf16>
    %cst_11 = arith.constant dense<0.000000e+00> : vector<32x256xf32>
    %17 = tpu.matmul %15, %16, %cst_11 {dimension_numbers = #tpu.dot_dimension_numbers<[1], [0], [0], [1], [0, 0, 1, 1], [], []>} : vector<32x128xbf16>, vector<128x256xbf16>, vector<32x256xf32> -> vector<32x256xf32>
    %c2 = arith.constant 2 : index
    %c0_12 = arith.constant 0 : index
    %18 = vector.load %arg12[%c2, %c0_12] : memref<10x512xf32, #tpu.memory_space<vmem>>, vector<1x256xf32>
    %19 = vector.broadcast %18 : vector<1x256xf32> to vector<32x256xf32>
    %20 = arith.addf %17, %19 : vector<32x256xf32>
    %21 = math.tanh %20 : vector<32x256xf32>
    %22 = arith.truncf %21 : vector<32x256xf32> to vector<32x256xbf16>
    %c0_13 = arith.constant 0 : index
    %c0_14 = arith.constant 0 : index
    %23 = vector.load %arg5[%c0_13, %c0_14] : memref<256x512xbf16, #tpu.memory_space<vmem>>, vector<256x512xbf16>
    %cst_15 = arith.constant dense<0.000000e+00> : vector<32x512xf32>
    %24 = tpu.matmul %22, %23, %cst_15 {dimension_numbers = #tpu.dot_dimension_numbers<[1], [0], [0], [1], [0, 0, 1, 1], [], []>} : vector<32x256xbf16>, vector<256x512xbf16>, vector<32x512xf32> -> vector<32x512xf32>
    %c3 = arith.constant 3 : index
    %c0_16 = arith.constant 0 : index
    %25 = vector.load %arg12[%c3, %c0_16] : memref<10x512xf32, #tpu.memory_space<vmem>>, vector<1x512xf32>
    %26 = vector.broadcast %25 : vector<1x512xf32> to vector<32x512xf32>
    %27 = arith.addf %24, %26 : vector<32x512xf32>
    %28 = math.tanh %27 : vector<32x512xf32>
    %29 = arith.truncf %28 : vector<32x512xf32> to vector<32x512xbf16>
    %c0_17 = arith.constant 0 : index
    %c0_18 = arith.constant 0 : index
    %30 = vector.load %arg6[%c0_17, %c0_18] : memref<512x256xbf16, #tpu.memory_space<vmem>>, vector<512x256xbf16>
    %cst_19 = arith.constant dense<0.000000e+00> : vector<32x256xf32>
    %31 = tpu.matmul %29, %30, %cst_19 {dimension_numbers = #tpu.dot_dimension_numbers<[1], [0], [0], [1], [0, 0, 1, 1], [], []>} : vector<32x512xbf16>, vector<512x256xbf16>, vector<32x256xf32> -> vector<32x256xf32>
    %c4 = arith.constant 4 : index
    %c0_20 = arith.constant 0 : index
    %32 = vector.load %arg12[%c4, %c0_20] : memref<10x512xf32, #tpu.memory_space<vmem>>, vector<1x256xf32>
    %33 = vector.broadcast %32 : vector<1x256xf32> to vector<32x256xf32>
    %34 = arith.addf %31, %33 : vector<32x256xf32>
    %35 = math.tanh %34 : vector<32x256xf32>
    %36 = arith.truncf %35 : vector<32x256xf32> to vector<32x256xbf16>
    %c0_21 = arith.constant 0 : index
    %c0_22 = arith.constant 0 : index
    %37 = vector.load %arg7[%c0_21, %c0_22] : memref<256x128xbf16, #tpu.memory_space<vmem>>, vector<256x128xbf16>
    %cst_23 = arith.constant dense<0.000000e+00> : vector<32x128xf32>
    %38 = tpu.matmul %36, %37, %cst_23 {dimension_numbers = #tpu.dot_dimension_numbers<[1], [0], [0], [1], [0, 0, 1, 1], [], []>} : vector<32x256xbf16>, vector<256x128xbf16>, vector<32x128xf32> -> vector<32x128xf32>
    %c5 = arith.constant 5 : index
    %c0_24 = arith.constant 0 : index
    %39 = vector.load %arg12[%c5, %c0_24] : memref<10x512xf32, #tpu.memory_space<vmem>>, vector<1x128xf32>
    %40 = vector.broadcast %39 : vector<1x128xf32> to vector<32x128xf32>
    %41 = arith.addf %38, %40 : vector<32x128xf32>
    %42 = math.tanh %41 : vector<32x128xf32>
    %43 = arith.truncf %42 : vector<32x128xf32> to vector<32x128xbf16>
    %c0_25 = arith.constant 0 : index
    %c0_26 = arith.constant 0 : index
    %44 = vector.load %arg8[%c0_25, %c0_26] : memref<128x128xbf16, #tpu.memory_space<vmem>>, vector<128x128xbf16>
    %cst_27 = arith.constant dense<0.000000e+00> : vector<32x128xf32>
    %45 = tpu.matmul %43, %44, %cst_27 {dimension_numbers = #tpu.dot_dimension_numbers<[1], [0], [0], [1], [0, 0, 1, 1], [], []>} : vector<32x128xbf16>, vector<128x128xbf16>, vector<32x128xf32> -> vector<32x128xf32>
    %c6 = arith.constant 6 : index
    %c0_28 = arith.constant 0 : index
    %46 = vector.load %arg12[%c6, %c0_28] : memref<10x512xf32, #tpu.memory_space<vmem>>, vector<1x128xf32>
    %47 = vector.broadcast %46 : vector<1x128xf32> to vector<32x128xf32>
    %48 = arith.addf %45, %47 : vector<32x128xf32>
    %49 = math.tanh %48 : vector<32x128xf32>
    %50 = arith.truncf %49 : vector<32x128xf32> to vector<32x128xbf16>
    %c0_29 = arith.constant 0 : index
    %c0_30 = arith.constant 0 : index
    %51 = vector.load %arg9[%c0_29, %c0_30] : memref<128x128xbf16, #tpu.memory_space<vmem>>, vector<128x128xbf16>
    %cst_31 = arith.constant dense<0.000000e+00> : vector<32x128xf32>
    %52 = tpu.matmul %50, %51, %cst_31 {dimension_numbers = #tpu.dot_dimension_numbers<[1], [0], [0], [1], [0, 0, 1, 1], [], []>} : vector<32x128xbf16>, vector<128x128xbf16>, vector<32x128xf32> -> vector<32x128xf32>
    %c7 = arith.constant 7 : index
    %c0_32 = arith.constant 0 : index
    %53 = vector.load %arg12[%c7, %c0_32] : memref<10x512xf32, #tpu.memory_space<vmem>>, vector<1x128xf32>
    %54 = vector.broadcast %53 : vector<1x128xf32> to vector<32x128xf32>
    %55 = arith.addf %52, %54 : vector<32x128xf32>
    %56 = math.tanh %55 : vector<32x128xf32>
    %57 = arith.truncf %56 : vector<32x128xf32> to vector<32x128xbf16>
    %c0_33 = arith.constant 0 : index
    %c0_34 = arith.constant 0 : index
    %58 = vector.load %arg10[%c0_33, %c0_34] : memref<128x128xbf16, #tpu.memory_space<vmem>>, vector<128x128xbf16>
    %cst_35 = arith.constant dense<0.000000e+00> : vector<32x128xf32>
    %59 = tpu.matmul %57, %58, %cst_35 {dimension_numbers = #tpu.dot_dimension_numbers<[1], [0], [0], [1], [0, 0, 1, 1], [], []>} : vector<32x128xbf16>, vector<128x128xbf16>, vector<32x128xf32> -> vector<32x128xf32>
    %c8 = arith.constant 8 : index
    %c0_36 = arith.constant 0 : index
    %60 = vector.load %arg12[%c8, %c0_36] : memref<10x512xf32, #tpu.memory_space<vmem>>, vector<1x128xf32>
    %61 = vector.broadcast %60 : vector<1x128xf32> to vector<32x128xf32>
    %62 = arith.addf %59, %61 : vector<32x128xf32>
    %63 = math.tanh %62 : vector<32x128xf32>
    %64 = arith.truncf %63 : vector<32x128xf32> to vector<32x128xbf16>
    %c0_37 = arith.constant 0 : index
    %c0_38 = arith.constant 0 : index
    %65 = vector.load %arg11[%c0_37, %c0_38] : memref<128x128xbf16, #tpu.memory_space<vmem>>, vector<128x128xbf16>
    %cst_39 = arith.constant dense<0.000000e+00> : vector<32x128xf32>
    %66 = tpu.matmul %64, %65, %cst_39 {dimension_numbers = #tpu.dot_dimension_numbers<[1], [0], [0], [1], [0, 0, 1, 1], [], []>} : vector<32x128xbf16>, vector<128x128xbf16>, vector<32x128xf32> -> vector<32x128xf32>
    %c9 = arith.constant 9 : index
    %c0_40 = arith.constant 0 : index
    %67 = vector.load %arg12[%c9, %c0_40] : memref<10x512xf32, #tpu.memory_space<vmem>>, vector<1x128xf32>
    %68 = vector.broadcast %67 : vector<1x128xf32> to vector<32x128xf32>
    %69 = arith.addf %66, %68 : vector<32x128xf32>
    %70 = vector.extract_strided_slice %69 {offsets = [0, 0], sizes = [32, 1], strides = [1, 1]} : vector<32x128xf32> to vector<32x1xf32>
    %c0_41 = arith.constant 0 : index
    %c0_42 = arith.constant 0 : index
    %71 = vector.load %arg13[%c0_41, %c0_42] : memref<32x1xf32, #tpu.memory_space<vmem>>, vector<32x1xf32>
    tpu.vector_store %arg13[%c0_41, %c0_42], %70 {strides = array<i32>} : memref<32x1xf32, #tpu.memory_space<vmem>>, vector<32x1xf32>,
    return
  }
  func.func @transform_0(%arg0: i32) -> (i32, i32) {
    %c0_i32 = arith.constant 0 : i32
    %c0_i32_0 = arith.constant 0 : i32
    return %arg0, %c0_i32 : i32, i32
  }
  func.func @transform_1(%arg0: i32) -> (i32, i32) {
    %c0_i32 = arith.constant 0 : i32
    %c0_i32_0 = arith.constant 0 : i32
    %c0_i32_1 = arith.constant 0 : i32
    return %c0_i32, %c0_i32_0 : i32, i32
  }
  func.func @transform_2(%arg0: i32) -> (i32, i32) {
    %c0_i32 = arith.constant 0 : i32
    %c0_i32_0 = arith.constant 0 : i32
    %c0_i32_1 = arith.constant 0 : i32
    return %c0_i32, %c0_i32_0 : i32, i32
  }
  func.func @transform_3(%arg0: i32) -> (i32, i32) {
    %c0_i32 = arith.constant 0 : i32
    %c0_i32_0 = arith.constant 0 : i32
    %c0_i32_1 = arith.constant 0 : i32
    return %c0_i32, %c0_i32_0 : i32, i32
  }
  func.func @transform_4(%arg0: i32) -> (i32, i32) {
    %c0_i32 = arith.constant 0 : i32
    %c0_i32_0 = arith.constant 0 : i32
    %c0_i32_1 = arith.constant 0 : i32
    return %c0_i32, %c0_i32_0 : i32, i32
  }
  func.func @transform_5(%arg0: i32) -> (i32, i32) {
    %c0_i32 = arith.constant 0 : i32
    %c0_i32_0 = arith.constant 0 : i32
    %c0_i32_1 = arith.constant 0 : i32
    return %c0_i32, %c0_i32_0 : i32, i32
  }
  func.func @transform_6(%arg0: i32) -> (i32, i32) {
    %c0_i32 = arith.constant 0 : i32
    %c0_i32_0 = arith.constant 0 : i32
    %c0_i32_1 = arith.constant 0 : i32
    return %c0_i32, %c0_i32_0 : i32, i32
  }
  func.func @transform_7(%arg0: i32) -> (i32, i32) {
    %c0_i32 = arith.constant 0 : i32
    %c0_i32_0 = arith.constant 0 : i32
    %c0_i32_1 = arith.constant 0 : i32
    return %c0_i32, %c0_i32_0 : i32, i32
  }
  func.func @transform_8(%arg0: i32) -> (i32, i32) {
    %c0_i32 = arith.constant 0 : i32
    %c0_i32_0 = arith.constant 0 : i32
    %c0_i32_1 = arith.constant 0 : i32
    return %c0_i32, %c0_i32_0 : i32, i32
  }
  func.func @transform_9(%arg0: i32) -> (i32, i32) {
    %c0_i32 = arith.constant 0 : i32
    %c0_i32_0 = arith.constant 0 : i32
    %c0_i32_1 = arith.constant 0 : i32
    return %c0_i32, %c0_i32_0 : i32, i32
  }
  func.func @transform_10(%arg0: i32) -> (i32, i32) {
    %c0_i32 = arith.constant 0 : i32
    %c0_i32_0 = arith.constant 0 : i32
    %c0_i32_1 = arith.constant 0 : i32
    return %c0_i32, %c0_i32_0 : i32, i32
  }
  func.func @transform_11(%arg0: i32) -> (i32, i32) {
    %c0_i32 = arith.constant 0 : i32
    %c0_i32_0 = arith.constant 0 : i32
    %c0_i32_1 = arith.constant 0 : i32
    return %c0_i32, %c0_i32_0 : i32, i32
  }
  func.func @transform_12(%arg0: i32) -> (i32, i32) {
    %c0_i32 = arith.constant 0 : i32
    %c0_i32_0 = arith.constant 0 : i32
    return %arg0, %c0_i32 : i32, i32
  }
}

</mosaic_0001>

<bundles_post_ra>
// kernel: tpu_custom_call.1
= control target key start
LH: loop header
LB: loop body
LE: loop exit
PB: predicated region body
PF: predicated region fallthrough
CT: control target
= control target key end

     0   :  { %17 = vsyncpa [#allocation3], 0  ;;  %s4241_s0 = inlined_call_operand.vmem [shape: f32[64,16], index: 0, kind: input, shape index: {}]   ;;  %s4242_s1 = inlined_call_operand.vmem [shape: bf16[16,128], index: 1, kind: input, shape index: {}]   ;;  %s4243_s2 = inlined_call_operand.vmem [shape: bf16[128,128], index: 2, kind: input, shape index: {}]   ;;  %s4244_s3 = inlined_call_operand.hbm [shape: bf16[128,256], index: 3, kind: input, shape index: {}]   ;;  %s4245_s4 = inlined_call_operand.hbm [shape: bf16[256,512], index: 4, kind: input, shape index: {}]   ;;  %s4246_s5 = inlined_call_operand.hbm [shape: bf16[512,256], index: 5, kind: input, shape index: {}]   ;;  %s4247_s6 = inlined_call_operand.hbm [shape: bf16[256,128], index: 6, kind: input, shape index: {}]   ;;  %s4248_s7 = inlined_call_operand.hbm [shape: bf16[128,128], index: 7, kind: input, shape index: {}]   ;;  %s4249_s8 = inlined_call_operand.hbm [shape: bf16[128,128], index: 8, kind: input, shape index: {}]   ;;  %s4250_s9 = inlined_call_operand.hbm [shape: bf16[128,128], index: 9, kind: input, shape index: {}]   ;;  %s4251_s10 = inlined_call_operand.hbm [shape: bf16[128,128], index: 10, kind: input, shape index: {}]   ;;  %s4252_s11 = inlined_call_operand.hbm [shape: f32[10,512], index: 11, kind: input, shape index: {}]   ;;  %s4253_s12 = inlined_call_operand.vmem [shape: f32[64,1], index: 12, kind: output, shape index: {}]  }
   0x1   :  { %18 = vsyncpa [#allocation5], 0 }
   0x2   :  { %19 = vsyncpa [#allocation8], 0 }
   0x3   :  { %20 = vsyncpa [#allocation11], 0 }
   0x4   :  { %21 = vsyncpa [#allocation14], 0  ;;  %s4036_s21 = smov 0  }
   0x5 LB: > { %s3953_s22 = smov [#allocation4]   ;;  %s4254_s24 = sadd.s32 4294967295, %s3951_s21   ;;  %s3951_s21 = sphi %s4036_s21, %s27_s21  }
   0x6   : > { %s346_s23 = sshll.u32 %s3953_s22, 4  ;;  %p2781_p0 = scmp.ge.s32.totalorder %s3951_s21, 1  ;;  %s347_s23 = int_to_ptr.vmem [resolvable:$true] %s346_s23 }
   0x7   : > { %p315_p1 = scmp.lt.s32.totalorder %s3951_s21, 3  ;;  %p4046_p2 = scmp.eq.s32.totalorder %s4254_s24, 0 }
   0x8   : > { %s3954_s27 = smov [#allocation7]   ;;  %s3955_s30 = smov [#allocation10]  }
   0x9   : > { %s4258_s25 = scalar_select %p4046_p2, 1, 0 }
   0xa   : > { %p4050_p3 = pnand %p2781_p0, %p315_p1  ;;  %s372_s28 = sshll.u32 %s3954_s27, 4  ;;  %s4056_s28 = int_to_ptr.vmem [resolvable:$true] %s372_s28 }
   0xb   : > { %s4064_s13 = sshll.u32 %s3955_s30, 4  ;;  %s3702_s15 = scalar_lea.vmem %s347_s23, 8192  ;;  %s399_s13 = int_to_ptr.vmem [resolvable:$true] %s4064_s13 }
   0xc   : > { %s4259_s26 = scalar_select %p4050_p3, 1, 0 }
   0xd   : > { %p3234_p4 = pneg %p4050_p3  ;;  %p3703_p7 = scmp.ne.s32.totalorder %s347_s23, %s3702_s15 }
   0xe   : > { %p3710_p10 = scmp.lt.s32.totalorder %s347_s23, %s347_s23  ;;  %p3711_p11 = scmp.lt.s32.totalorder %s3702_s15, %s3702_s15 }
   0xf   : > { %p4060_p5 = pnand %p4046_p2, %p3234_p4 }
  0x10   : > { %p3712_p12 = por %p3711_p11, %p3710_p10 }
  0x11   : > { %p4068_p6 = pneg %p4060_p5 }
  0x13   : > { %p3705_p8 = pnand %p3703_p7, %p4068_p6 }
  0x15   : > { %p3706_p9 = pneg %p3705_p8 }
  0x17   : > { %p3713_p13 = pnand %p3712_p12, %p3706_p9 }
  0x19   : > { %3716 = shalt.err (!%p3713_p13)
}
  0x1a   : > { %s3956_s16 = smov 256   ;;  %s3957_s17 = smov 16  }
  0x1b   : > { %3240 = dma.hbm_to_vmem [thread:$0]  (!%p4060_p5), %s4245_s4, 8192, %s347_s23, [#allocation5], %s3956_s16, %s3956_s16, %s3957_s17  }
  0x1c   : > { %s3728_s20 = scalar_lea.vmem %s4056_s28, 2048  ;;  %p3736_p7 = scmp.lt.s32.totalorder %s4056_s28, %s4056_s28 }
  0x1d   : > { %p3729_p0 = scmp.ne.s32.totalorder %s4056_s28, %s3728_s20  ;;  %p3737_p8 = scmp.lt.s32.totalorder %s3728_s20, %s3728_s20 }
  0x1f   : > { %p3731_p1 = pnand %p3729_p0, %p4068_p6  ;;  %p3738_p9 = por %p3737_p8, %p3736_p7 }
  0x21   : > { %p3732_p4 = pneg %p3731_p1 }
  0x23   : > { %p3739_p10 = pnand %p3738_p9, %p3732_p4 }
  0x25   : > { %3742 = shalt.err (!%p3739_p10)
}
  0x26   : > { %s3958_s22 = smov 64   ;;  %s3959_s27 = smov 4  }
  0x27   : > { %3246 = dma.hbm_to_vmem [thread:$0]  (!%p4060_p5), %s4247_s6, 2048, %s4056_s28, [#allocation8], %s3958_s22, %s3958_s22, %s3959_s27  }
  0x28   : > { %s3960_s15 = smov [#allocation13]   ;;  %s3754_s17 = scalar_lea.vmem %s399_s13, 1024 }
  0x29   : > { %s424_s16 = sshll.u32 %s3960_s15, 4  ;;  %p3755_p11 = scmp.ne.s32.totalorder %s399_s13, %s3754_s17  ;;  %s425_s16 = int_to_ptr.vmem [resolvable:$true] %s424_s16 }
  0x2a   : > { %p3762_p0 = scmp.lt.s32.totalorder %s399_s13, %s399_s13  ;;  %p3763_p1 = scmp.lt.s32.totalorder %s3754_s17, %s3754_s17 }
  0x2b   : > { %p3757_p12 = pnand %p3755_p11, %p4068_p6 }
  0x2c   : > { %p3764_p4 = por %p3763_p1, %p3762_p0 }
  0x2d   : > { %p3758_p13 = pneg %p3757_p12 }
  0x2f   : > { %p3765_p7 = pnand %p3764_p4, %p3758_p13 }
  0x31   : > { %3768 = shalt.err (!%p3765_p7)
}
  0x32   : > { %3252 = dma.hbm_to_vmem [thread:$0]  (!%p4060_p5), %s4249_s8, 1024, %s399_s13, [#allocation11], %s3958_s22, %s3958_s22, %s3959_s27  }
  0x33   : > { %s3780_s19 = scalar_lea.vmem %s425_s16, 1024  ;;  %p3788_p11 = scmp.lt.s32.totalorder %s425_s16, %s425_s16 }
  0x34   : > { %p3781_p8 = scmp.ne.s32.totalorder %s425_s16, %s3780_s19  ;;  %p3789_p12 = scmp.lt.s32.totalorder %s3780_s19, %s3780_s19 }
  0x36   : > { %p3783_p9 = pnand %p3781_p8, %p4068_p6  ;;  %p3790_p13 = por %p3789_p12, %p3788_p11 }
  0x38   : > { %p3784_p10 = pneg %p3783_p9 }
  0x3a   : > { %p3791_p0 = pnand %p3790_p13, %p3784_p10 }
  0x3c   : > { %3794 = shalt.err (!%p3791_p0)
}
  0x3d   : > { %3258 = dma.hbm_to_vmem [thread:$0]  (!%p4060_p5), %s4251_s10, 1024, %s425_s16, [#allocation14], %s3958_s22, %s3958_s22, %s3959_s27  }
  0x3e   : > { %s3961_s13 = smov [#allocation2]  }
  0x3f   : > { %s333_s30 = sshll.u32 %s3961_s13, 4  ;;  %s334_s30 = int_to_ptr.vmem [resolvable:$true] %s333_s30 }
  0x40   : > { %s3806_s15 = scalar_lea.vmem %s334_s30, 2048  ;;  %p3814_p8 = scmp.lt.s32.totalorder %s334_s30, %s334_s30 }
  0x41   : > { %p3807_p1 = scmp.ne.s32.totalorder %s334_s30, %s3806_s15  ;;  %p3815_p9 = scmp.lt.s32.totalorder %s3806_s15, %s3806_s15 }
  0x43   : > { %p3809_p4 = pnand %p3807_p1, %p4068_p6  ;;  %p3816_p10 = por %p3815_p9, %p3814_p8 }
  0x45   : > { %p3810_p7 = pneg %p3809_p4 }
  0x47   : > { %p3817_p11 = pnand %p3816_p10, %p3810_p7 }
  0x49   : > { %3820 = shalt.err (!%p3817_p11)
}
  0x4a   : > { %s3962_s17 = smov 128   ;;  %s3963_s18 = smov 8  }
  0x4b   : > { %3237 = dma.hbm_to_vmem [thread:$0]  (!%p4060_p5), %s4244_s3, 2048, %s334_s30, [#allocation3], %s3962_s17, %s3962_s17, %s3963_s18  }
  0x4c   : > { %s3964_s19 = smov [#allocation6]   ;;  %s3965_s23 = smov [#allocation9]  }
  0x4d   : > { %s359_s20 = sshll.u32 %s3964_s19, 4  ;;  %s385_s13 = sshll.u32 %s3965_s23, 4  ;;  %s360_s20 = int_to_ptr.vmem [resolvable:$true] %s359_s20  ;;  %s386_s13 = int_to_ptr.vmem [resolvable:$true] %s385_s13 }
  0x4e   : > { %s3832_s24 = scalar_lea.vmem %s360_s20, 8192  ;;  %p3840_p1 = scmp.lt.s32.totalorder %s360_s20, %s360_s20 }
  0x4f   : > { %p3833_p12 = scmp.ne.s32.totalorder %s360_s20, %s3832_s24  ;;  %p3841_p4 = scmp.lt.s32.totalorder %s3832_s24, %s3832_s24 }
  0x51   : > { %p3835_p13 = pnand %p3833_p12, %p4068_p6  ;;  %p3842_p7 = por %p3841_p4, %p3840_p1 }
  0x53   : > { %p3836_p0 = pneg %p3835_p13 }
  0x55   : > { %p3843_p8 = pnand %p3842_p7, %p3836_p0 }
  0x57   : > { %3846 = shalt.err (!%p3843_p8)
}
  0x58   : > { %3243 = dma.hbm_to_vmem [thread:$0]  (!%p4060_p5), %s4246_s5, 8192, %s360_s20, [#allocation5], %s3962_s17, %s3962_s17, %s3963_s18  }
  0x59   : > { %s3858_s28 = scalar_lea.vmem %s386_s13, 1024  ;;  %p3866_p2 = scmp.lt.s32.totalorder %s386_s13, %s386_s13 }
  0x5a   : > { %p3859_p9 = scmp.ne.s32.totalorder %s386_s13, %s3858_s28  ;;  %p3867_p12 = scmp.lt.s32.totalorder %s3858_s28, %s3858_s28 }
  0x5c   : > { %p3861_p10 = pnand %p3859_p9, %p4068_p6  ;;  %p3868_p13 = por %p3867_p12, %p3866_p2 }
  0x5e   : > { %p3862_p11 = pneg %p3861_p10 }
  0x60   : > { %p3869_p3 = pnand %p3868_p13, %p3862_p11 }
  0x62   : > { %3872 = shalt.err (!%p3869_p3)
}
  0x63   : > { %3249 = dma.hbm_to_vmem [thread:$0]  (!%p4060_p5), %s4248_s7, 1024, %s386_s13, [#allocation8], %s3958_s22, %s3958_s22, %s3959_s27  }
  0x64   : > { %s3966_s17 = smov [#allocation12]   ;;  %s3967_s19 = smov [#allocation15]  }
  0x65   : > { %s411_s18 = sshll.u32 %s3966_s17, 4  ;;  %s437_s20 = sshll.u32 %s3967_s19, 4  ;;  %s412_s18 = int_to_ptr.vmem [resolvable:$true] %s411_s18  ;;  %s438_s20 = int_to_ptr.vmem [resolvable:$true] %s437_s20 }
  0x66   : > { %s3884_s23 = scalar_lea.vmem %s412_s18, 1024  ;;  %p3892_p1 = scmp.lt.s32.totalorder %s412_s18, %s412_s18 }
  0x67   : > { %p3885_p2 = scmp.ne.s32.totalorder %s412_s18, %s3884_s23  ;;  %p3893_p4 = scmp.lt.s32.totalorder %s3884_s23, %s3884_s23 }
  0x69   : > { %p3887_p3 = pnand %p3885_p2, %p4068_p6  ;;  %p3894_p7 = por %p3893_p4, %p3892_p1 }
  0x6b   : > { %p3888_p0 = pneg %p3887_p3 }
  0x6d   : > { %p3895_p8 = pnand %p3894_p7, %p3888_p0 }
  0x6f   : > { %3898 = shalt.err (!%p3895_p8)
}
  0x70   : > { %3255 = dma.hbm_to_vmem [thread:$0]  (!%p4060_p5), %s4250_s9, 1024, %s412_s18, [#allocation11], %s3958_s22, %s3958_s22, %s3959_s27  }
  0x71   : > { %s3910_s30 = scalar_lea.vmem %s438_s20, 1024  ;;  %p3918_p12 = scmp.lt.s32.totalorder %s438_s20, %s438_s20 }
  0x72   : > { %p3911_p9 = scmp.ne.s32.totalorder %s438_s20, %s3910_s30  ;;  %p3919_p13 = scmp.lt.s32.totalorder %s3910_s30, %s3910_s30 }
  0x74   : > { %p3913_p10 = pnand %p3911_p9, %p4068_p6  ;;  %p3920_p2 = por %p3919_p13, %p3918_p12 }
  0x76   : > { %p3914_p11 = pneg %p3913_p10 }
  0x78   : > { %p3921_p3 = pnand %p3920_p2, %p3914_p11 }
  0x7a   : > { %3924 = shalt.err (!%p3921_p3)
}
  0x7b   : > { %s3968_s28 = smov 512   ;;  %s3969_s24 = smov 32  }
  0x7c   : > { %3261 = dma.hbm_to_vmem [thread:$0]  (!%p4060_p5), %s4252_s11, 1024, %s438_s20, [#allocation14], %s3968_s28, %s3968_s28, %s3969_s24  }
  0x7d   : > { %p4262_p0 = scmp.ne.s32.totalorder %s4259_s26, 0 }
  0x7e   : > { %p4263_p1 = scmp.ne.s32.totalorder (!%p4262_p0), %s4258_s25, 0 }
  0x7f   : > { %462 = sbr.rel (%p4262_p0) target bundleno = 2326 (0x916), region = 68 }
  0x84   : > { %3930 = dma.done.wait (%p4263_p1), [#allocation3], 2048  }
  0x85   : > { %3932 = vsyncadd (%p4263_p1), [#allocation3], 4294965248 }
  0x86   : > { %3934 = dma.done.wait (%p4263_p1), [#allocation5], 16384  }
  0x87   : > { %3936 = vsyncadd (%p4263_p1), [#allocation5], 4294950912 }
  0x88   : > { %3938 = dma.done.wait (%p4263_p1), [#allocation8], 3072  }
  0x89   : > { %3940 = vsyncadd (%p4263_p1), [#allocation8], 4294964224 }
  0x8a   : > { %3942 = dma.done.wait (%p4263_p1), [#allocation11], 2048  }
  0x8b   : > { %3944 = vsyncadd (%p4263_p1), [#allocation11], 4294965248 }
  0x8c   : > { %3946 = dma.done.wait (%p4263_p1), [#allocation14], 2048  }
  0x8d   : > { %3948 = vsyncadd (%p4263_p1), [#allocation14], 4294965248  ;;  %s4264_s26 = sadd.s32 4294967295, %s3951_s21   ;;  %v3306_v0 = vld [vmem:[%s4242_s1] sm:$0xff]   ;;  %vm564_vm0 = vcmask 130048   ;;  %v3307_v7 = vld [vmem:[%s4243_s2 + $0x38] sm:$0xff]  }
  0x8e   : > { %s2802_s29 = sshll.u32 %s4264_s26, 2  ;;  %3092 = vmatprep.subr.bf16.mxu0 %v3306_v0  ;;  %v3308_v8 = vld [vmem:[%s4243_s2 + $0x30] sm:$0xff]   ;;  %3098 = vmatprep.subr.bf16.mxu1 %v3307_v7  ;;  %v3309_v9 = vld [vmem:[%s4243_s2 + $0x28] sm:$0xff]   ;;  %v3310_v10 = vld [vmem:[%s4243_s2 + $0x20] sm:$0xff]   ;;  %v3970_v43 = vmov 0   ;;  %vm2630_vm1 = vcmask 7168  }
  0x8f   : > { %p537_p5 = scmp.lt.s32.totalorder %s2802_s29, 7  ;;  %3093 = vmatpush3.bf16.msra.mxu0 %v3306_v0  ;;  %3099 = vmatpush3.bf16.msra.mxu1 %v3307_v7  ;;  %v3311_v11 = vld [vmem:[%s4243_s2 + $0x18] sm:$0xff]   ;;  %v3312_v12 = vld [vmem:[%s4243_s2 + $0x10] sm:$0xff]   ;;  %v3313_v13 = vld [vmem:[%s4243_s2 + $0x8] sm:$0xff]  }
  0x90   : > { %3100 = vmatprep.subr.bf16.mxu1 %v3308_v8  ;;  %v3314_v14 = vld [vmem:[%s4243_s2] sm:$0xff]   ;;  %v3315_v15 = vld [vmem:[#allocation2 + $0x70] ss:$8 sps:$4 sm:$0xff]   ;;  %v3317_v16 = vld [vmem:[#allocation2 + $0x74] ss:$8 sps:$4 sm:$0xff]  }
  0x91   : > { %s4266_s29 = smov (!%p537_p5, %s2802_s29), 7  ;;  %v3320_v17 = vld [vmem:[#allocation2 + $0x64] ss:$8 sps:$4 sm:$0xff]   ;;  %855 = vmatprep.subr.bf16.mxu0 %v3317_v16  ;;  %v3318_v18 = vld [vmem:[#allocation2 + $0x60] ss:$8 sps:$4 sm:$0xff]  }
  0x92   : > { %s2803_s14 = sshll.u32 %s4266_s29, 3  ;;  %v557_v20 = vld [vmem:[#allocation15] ss:$0 sm:$0xff]  ;;  %v3323_v34 = vld [vmem:[#allocation2 + $0x54] ss:$8 sps:$4 sm:$0xff]  }
  0x93   : > { %s540_s18 = scalar_lea.vmem %s4241_s0, %s2803_s14  ;;  %3101 = vmatpush3.bf16.msra.mxu1 %v3308_v8  ;;  %v3321_v35 = vld [vmem:[#allocation2 + $0x50] ss:$8 sps:$4 sm:$0xff]   ;;  %v3326_v36 = vld [vmem:[#allocation2 + $0x44] ss:$8 sps:$4 sm:$0xff]   ;;  %v3324_v37 = vld [vmem:[#allocation2 + $0x40] ss:$8 sps:$4 sm:$0xff]   ;;  %s546_s15 = scalar_lea.vmem %s4253_s12, %s2803_s14 }
  0x94   : > { %v549_v1 = vld [vmem:[%s540_s18] sm:$0xff]  ;;  %v550_v2 = vld [vmem:[%s540_s18 + $0x8] sm:$0xff]  ;;  %v551_v3 = vld [vmem:[%s540_s18 + $0x10] sm:$0xff]  ;;  %3102 = vmatprep.subr.bf16.mxu1 %v3309_v9 }
  0x95   : > { %v553_v4 = vpack.c.bf16 %v550_v2, %v549_v1  ;;  %v552_v5 = vld [vmem:[%s540_s18 + $0x18] sm:$0xff]  ;;  %v3332_v40 = vld [vmem:[#allocation2 + $0x24] ss:$8 sps:$4 sm:$0xff]   ;;  %v3330_v41 = vld [vmem:[#allocation2 + $0x20] ss:$8 sps:$4 sm:$0xff]  }
  0x96   : > { %v554_v6 = vpack.c.bf16 %v552_v5, %v551_v3  ;;  %v3329_v38 = vld [vmem:[#allocation2 + $0x34] ss:$8 sps:$4 sm:$0xff]   ;;  %v3327_v39 = vld [vmem:[#allocation2 + $0x30] ss:$8 sps:$4 sm:$0xff]   ;;  %v3338_v45 = vld [vmem:[#allocation2 + $0x4] ss:$8 sps:$4 sm:$0xff]  }
  0x97   : > { %3094 = vmatprep.mubr.msk.bf16.mxu0 %vm564_vm0, %v553_v4  ;;  %3103 = vmatpush3.bf16.msra.mxu1 %v3309_v9  ;;  %v3335_v42 = vld [vmem:[#allocation2 + $0x14] ss:$8 sps:$4 sm:$0xff]   ;;  %v3333_v44 = vld [vmem:[#allocation2 + $0x10] ss:$8 sps:$4 sm:$0xff]   ;;  %v3336_v46 = vld [vmem:[#allocation2] ss:$8 sps:$4 sm:$0xff]  }
  0x98   : > { %3095 = vmatmul.mubr.msk.bf16.vlgmr.msra.gmra.mxu0 %vm564_vm0, %v554_v6  ;;  %3104 = vmatprep.subr.bf16.mxu1 %v3310_v10  ;;  %v3339_v47 = vld [vmem:[#allocation4 + $0xe0] ss:$16 sps:$4 sm:$0xff]   ;;  %v3341_v48 = vld [vmem:[#allocation4 + $0xe4] ss:$16 sps:$4 sm:$0xff]   ;;  %v3344_v49 = vld [vmem:[#allocation4 + $0xec] ss:$16 sps:$4 sm:$0xff]  }
  0x99   : > { %856 = vmatpush1.bf16.msra.mxu0 %v3315_v15  ;;  %887 = vmatprep.mubr.bf16.mxu0 %v3970_v43  ;;  %v3347_v50 = vld [vmem:[#allocation4 + $0xc4] ss:$16 sps:$4 sm:$0xff]   ;;  %v3345_v51 = vld [vmem:[#allocation4 + $0xc0] ss:$16 sps:$4 sm:$0xff]   ;;  %v3342_v15 = vld [vmem:[#allocation4 + $0xe8] ss:$16 sps:$4 sm:$0xff]  }
  0x9a   : > { %857 = vmatprep.subr.bf16.mxu0 %v3320_v17  ;;  %v3353_v52 = vld [vmem:[#allocation4 + $0xa4] ss:$16 sps:$4 sm:$0xff]   ;;  %v3351_v53 = vld [vmem:[#allocation4 + $0xa0] ss:$16 sps:$4 sm:$0xff]   ;;  %v3350_v17 = vld [vmem:[#allocation4 + $0xcc] ss:$16 sps:$4 sm:$0xff]  }
  0x9b   : > { %3105 = vmatpush3.bf16.msra.mxu1 %v3310_v10  ;;  %v3359_v54 = vld [vmem:[#allocation4 + $0x84] ss:$16 sps:$4 sm:$0xff]   ;;  %v3357_v55 = vld [vmem:[#allocation4 + $0x80] ss:$16 sps:$4 sm:$0xff]  }
  0x9c   : > { %3106 = vmatprep.subr.bf16.mxu1 %v3311_v11  ;;  %v3365_v56 = vld [vmem:[#allocation4 + $0x64] ss:$16 sps:$4 sm:$0xff]   ;;  %v3363_v57 = vld [vmem:[#allocation4 + $0x60] ss:$16 sps:$4 sm:$0xff]  }
  0x9d   : > { %858 = vmatpush1.bf16.msra.mxu0 %v3318_v18  ;;  %v3371_v58 = vld [vmem:[#allocation4 + $0x44] ss:$16 sps:$4 sm:$0xff]   ;;  %v3369_v59 = vld [vmem:[#allocation4 + $0x40] ss:$16 sps:$4 sm:$0xff]   ;;  %v3348_v18 = vld [vmem:[#allocation4 + $0xc8] ss:$16 sps:$4 sm:$0xff]  }
  0x9e   : > { %859 = vmatprep.subr.bf16.mxu0 %v3323_v34  ;;  %v3377_v60 = vld [vmem:[#allocation4 + $0x24] ss:$16 sps:$4 sm:$0xff]   ;;  %v3375_v61 = vld [vmem:[#allocation4 + $0x20] ss:$16 sps:$4 sm:$0xff]   ;;  %v3392_v34 = vld [vmem:[#allocation4 + $0x1ec] ss:$16 sps:$4 sm:$0xff]  }
  0x9f   : > { %3107 = vmatpush3.bf16.msra.mxu1 %v3311_v11  ;;  %v3383_v62 = vld [vmem:[#allocation4 + $0x4] ss:$16 sps:$4 sm:$0xff]   ;;  %v3381_v63 = vld [vmem:[#allocation4] ss:$16 sps:$4 sm:$0xff]  }
  0xa0   : > { %3108 = vmatprep.subr.bf16.mxu1 %v3312_v12  ;;  %v3389_v0 = vld [vmem:[#allocation4 + $0x1e4] ss:$16 sps:$4 sm:$0xff]   ;;  %v3387_v1 = vld [vmem:[#allocation4 + $0x1e0] ss:$16 sps:$4 sm:$0xff]  }
  0xa1   : > { %860 = vmatpush1.bf16.msra.mxu0 %v3321_v35  ;;  %v3395_v2 = vld [vmem:[#allocation4 + $0x1c4] ss:$16 sps:$4 sm:$0xff]   ;;  %v3393_v3 = vld [vmem:[#allocation4 + $0x1c0] ss:$16 sps:$4 sm:$0xff]   ;;  %v3390_v35 = vld [vmem:[#allocation4 + $0x1e8] ss:$16 sps:$4 sm:$0xff]  }
  0xa2   : > { %861 = vmatprep.subr.bf16.mxu0 %v3326_v36  ;;  %v642_v6 = vld [vmem:[#allocation15 + $0x1] ss:$0 sm:$0xff]  ;;  %v3398_v36 = vld [vmem:[#allocation4 + $0x1cc] ss:$16 sps:$4 sm:$0xff]  }
  0xa3   : > { %3109 = vmatpush3.bf16.msra.mxu1 %v3312_v12 }
  0xa4   : > { %3110 = vmatprep.subr.bf16.mxu1 %v3313_v13 }
  0xa5   : > { %862 = vmatpush1.bf16.msra.mxu0 %v3324_v37  ;;  %v3396_v37 = vld [vmem:[#allocation4 + $0x1c8] ss:$16 sps:$4 sm:$0xff]  }
  0xa6   : > { %863 = vmatprep.subr.bf16.mxu0 %v3329_v38  ;;  %v3401_v38 = vld [vmem:[#allocation4 + $0x1a4] ss:$16 sps:$4 sm:$0xff]  }
  0xa7   : > { %3111 = vmatpush3.bf16.msra.mxu1 %v3313_v13 }
  0xa8   : > { %3112 = vmatprep.subr.bf16.mxu1 %v3314_v14 }
  0xa9   : > { %864 = vmatpush1.bf16.msra.mxu0 %v3327_v39  ;;  %v3404_v39 = vld [vmem:[#allocation4 + $0x1ac] ss:$16 sps:$4 sm:$0xff]  }
  0xaa   : > { %865 = vmatprep.subr.bf16.mxu0 %v3332_v40  ;;  %v3399_v40 = vld [vmem:[#allocation4 + $0x1a0] ss:$16 sps:$4 sm:$0xff]  }
  0xab   : > { %3113 = vmatpush3.bf16.msra.mxu1 %v3314_v14 }
  0xac   : > { %1327 = vmatprep.subr.bf16.mxu1 %v3341_v48  ;;  %v3411_v48 = vld [vmem:[#allocation4 + $0x160] ss:$16 sps:$4 sm:$0xff]  }
  0xad   : > { %866 = vmatpush1.bf16.msra.mxu0 %v3330_v41  ;;  %v3402_v41 = vld [vmem:[#allocation4 + $0x1a8] ss:$16 sps:$4 sm:$0xff]  }
  0xae   : > { %867 = vmatprep.subr.bf16.mxu0 %v3335_v42  ;;  %v3407_v42 = vld [vmem:[#allocation4 + $0x184] ss:$16 sps:$4 sm:$0xff]  }
  0xb1   : > { %868 = vmatpush1.bf16.msra.mxu0 %v3333_v44  ;;  %v3405_v44 = vld [vmem:[#allocation4 + $0x180] ss:$16 sps:$4 sm:$0xff]  }
  0xb2   : > { %869 = vmatprep.subr.bf16.mxu0 %v3338_v45  ;;  %v3408_v45 = vld [vmem:[#allocation4 + $0x188] ss:$16 sps:$4 sm:$0xff]  }
  0xb5   : > { %870 = vmatpush1.bf16.msra.mxu0 %v3336_v46  ;;  %v3413_v46 = vld [vmem:[#allocation4 + $0x164] ss:$16 sps:$4 sm:$0xff]  }
  0xb6   : > { %1380 = vmatprep.subr.bf16.mxu0 %v3344_v49  ;;  %v3414_v49 = vld [vmem:[#allocation4 + $0x168] ss:$16 sps:$4 sm:$0xff]  }
 0x158   : > { %v3096_v19 = vpop.f32.mrf.mxu0 }
 0x159   : > { %v614_v25 = vadd.f32 %v3096_v19, %v557_v20  ;;  %v3356_v19 = vld [vmem:[#allocation4 + $0xac] ss:$16 sps:$4 sm:$0xff]  }
 0x15a   : > { %v605_v21 = vpop.f32.mrf.mxu0 }
 0x15b   : > { %v606_v22 = vadd.f32 %v605_v21, %v557_v20 }
 0x15c   : > { %v3097_v23 = vpop.f32.mrf.mxu0 }
 0x15d   : > { %v617_v24 = vadd.f32 %v3097_v23, %v557_v20  ;;  %3579 = vtanh.f32 %v606_v22  ;;  %v3354_v22 = vld [vmem:[#allocation4 + $0xa8] ss:$16 sps:$4 sm:$0xff]  }
 0x15e   : > { %v608_v26 = vpop.f32.mrf.mxu0 }
 0x15f   : > { %v609_v27 = vadd.f32 %v608_v26, %v557_v20  ;;  %3581 = vtanh.f32 %v617_v24  ;;  %v3362_v24 = vld [vmem:[#allocation4 + $0x8c] ss:$16 sps:$4 sm:$0xff]  }
 0x160   : > { %v3368_v26 = vld [vmem:[#allocation4 + $0x6c] ss:$16 sps:$4 sm:$0xff]  }
 0x161   : > { %3583 = vtanh.f32 %v609_v27  ;;  %v3366_v27 = vld [vmem:[#allocation4 + $0x68] ss:$16 sps:$4 sm:$0xff]  }
 0x162   : > { %3585 = vtanh.f32 %v614_v25  ;;  %v3360_v25 = vld [vmem:[#allocation4 + $0x88] ss:$16 sps:$4 sm:$0xff]  }
 0x16a   : > { %v3580_v28 = vpop.eup %3579 }
 0x16c   : > { %v3582_v29 = vpop.eup %3581 }
 0x16e   : > { %v3584_v30 = vpop.eup %3583 }
 0x16f   : > { %v3586_v31 = vpop.eup %3585  ;;  %v624_v32 = vpack.c.bf16 %v3584_v30, %v3580_v28  ;;  %v3374_v28 = vld [vmem:[#allocation4 + $0x4c] ss:$16 sps:$4 sm:$0xff]  }
 0x170   : > { %v625_v33 = vpack.c.bf16 %v3582_v29, %v3586_v31  ;;  %v3372_v29 = vld [vmem:[#allocation4 + $0x48] ss:$16 sps:$4 sm:$0xff]   ;;  %v3380_v30 = vld [vmem:[#allocation4 + $0x2c] ss:$16 sps:$4 sm:$0xff]  }
 0x171   : > { %3114 = vmatprep.mubr.bf16.mxu1 %v624_v32  ;;  %v3378_v31 = vld [vmem:[#allocation4 + $0x28] ss:$16 sps:$4 sm:$0xff]   ;;  %v3386_v32 = vld [vmem:[#allocation4 + $0xc] ss:$16 sps:$4 sm:$0xff]  }
 0x172   : > { %3115 = vmatmul.mubr.bf16.vlgmr.msra.gmra.mxu1 %v625_v33  ;;  %v3384_v33 = vld [vmem:[#allocation4 + $0x8] ss:$16 sps:$4 sm:$0xff]  }
 0x173   : > { %1328 = vmatpush1.bf16.msra.mxu1 %v3339_v47  ;;  %v3416_v47 = vld [vmem:[#allocation4 + $0x16c] ss:$16 sps:$4 sm:$0xff]  }
 0x174   : > { %1329 = vmatprep.subr.bf16.mxu1 %v3347_v50  ;;  %v3419_v50 = vld [vmem:[#allocation4 + $0x144] ss:$16 sps:$4 sm:$0xff]  }
 0x177   : > { %1330 = vmatpush1.bf16.msra.mxu1 %v3345_v51  ;;  %v3422_v51 = vld [vmem:[#allocation4 + $0x14c] ss:$16 sps:$4 sm:$0xff]  }
 0x178   : > { %1331 = vmatprep.subr.bf16.mxu1 %v3353_v52  ;;  %v3417_v52 = vld [vmem:[#allocation4 + $0x140] ss:$16 sps:$4 sm:$0xff]  }
 0x17b   : > { %1332 = vmatpush1.bf16.msra.mxu1 %v3351_v53  ;;  %v3420_v53 = vld [vmem:[#allocation4 + $0x148] ss:$16 sps:$4 sm:$0xff]  }
 0x17c   : > { %1333 = vmatprep.subr.bf16.mxu1 %v3359_v54  ;;  %v3425_v54 = vld [vmem:[#allocation4 + $0x124] ss:$16 sps:$4 sm:$0xff]  }
 0x17f   : > { %1334 = vmatpush1.bf16.msra.mxu1 %v3357_v55  ;;  %v3428_v55 = vld [vmem:[#allocation4 + $0x12c] ss:$16 sps:$4 sm:$0xff]  }
 0x180   : > { %1335 = vmatprep.subr.bf16.mxu1 %v3365_v56  ;;  %v3423_v56 = vld [vmem:[#allocation4 + $0x120] ss:$16 sps:$4 sm:$0xff]  }
 0x183   : > { %1336 = vmatpush1.bf16.msra.mxu1 %v3363_v57  ;;  %v3426_v57 = vld [vmem:[#allocation4 + $0x128] ss:$16 sps:$4 sm:$0xff]  }
 0x184   : > { %1337 = vmatprep.subr.bf16.mxu1 %v3371_v58  ;;  %v3431_v58 = vld [vmem:[#allocation4 + $0x104] ss:$16 sps:$4 sm:$0xff]  }
 0x187   : > { %1338 = vmatpush1.bf16.msra.mxu1 %v3369_v59  ;;  %v3434_v59 = vld [vmem:[#allocation4 + $0x10c] ss:$16 sps:$4 sm:$0xff]  }
 0x188   : > { %1339 = vmatprep.subr.bf16.mxu1 %v3377_v60  ;;  %v3429_v60 = vld [vmem:[#allocation4 + $0x100] ss:$16 sps:$4 sm:$0xff]  }
 0x18b   : > { %1340 = vmatpush1.bf16.msra.mxu1 %v3375_v61  ;;  %v3432_v61 = vld [vmem:[#allocation4 + $0x108] ss:$16 sps:$4 sm:$0xff]  }
 0x18c   : > { %1341 = vmatprep.subr.bf16.mxu1 %v3383_v62  ;;  %v3437_v62 = vld [vmem:[#allocation6 + $0x74] ss:$8 sps:$4 sm:$0xff]  }
 0x18f   : > { %1342 = vmatpush1.bf16.msra.mxu1 %v3381_v63  ;;  %v3440_v63 = vld [vmem:[#allocation6 + $0x174] ss:$8 sps:$4 sm:$0xff]  }
 0x190   : > { %1343 = vmatprep.subr.bf16.mxu1 %v3389_v0  ;;  %v765_v0 = vlaneseq }
 0x193   : > { %1344 = vmatpush2.bf16.msra.mxu1 %v3387_v1  ;;  %v4217_v1 = vshrl.u32 %v765_v0, 7  ;;  %v3480_v0 = vld [vmem:[#allocation6 + $0x100] ss:$8 sps:$4 sm:$0xff]  }
 0x194   : > { %1345 = vmatprep.subr.bf16.mxu1 %v3395_v2 }
 0x195   : > { %v4220_v2 = vsub.s32 1, %v4217_v1 }
 0x197   : > { %1346 = vmatpush2.bf16.msra.mxu1 %v3393_v3  ;;  %v763_v3 = vld [vmem:[#allocation15 + $0x2] ss:$8 sm:$0x3] }
 0x198   : > { %1347 = vmatprep.subr.bf16.mxu1 %v3401_v38 }
 0x19b   : > { %1348 = vmatpush2.bf16.msra.mxu1 %v3399_v40 }
 0x19c   : > { %1349 = vmatprep.subr.bf16.mxu1 %v3407_v42  ;;  %v3447_v42 = vld [vmem:[#allocation6 + $0x50] ss:$8 sps:$4 sm:$0xff]  }
 0x19f   : > { %1350 = vmatpush2.bf16.msra.mxu1 %v3405_v44 }
 0x1a0   : > { %1351 = vmatprep.subr.bf16.mxu1 %v3413_v46  ;;  %v3458_v46 = vld [vmem:[#allocation6 + $0x144] ss:$8 sps:$4 sm:$0xff]  }
 0x1a3   : > { %1352 = vmatpush2.bf16.msra.mxu1 %v3411_v48  ;;  %v3456_v48 = vld [vmem:[#allocation6 + $0x140] ss:$8 sps:$4 sm:$0xff]  }
 0x1a4   : > { %1353 = vmatprep.subr.bf16.mxu1 %v3419_v50  ;;  %v3464_v50 = vld [vmem:[#allocation6 + $0x134] ss:$8 sps:$4 sm:$0xff]  }
 0x1a7   : > { %1354 = vmatpush2.bf16.msra.mxu1 %v3417_v52  ;;  %v3462_v52 = vld [vmem:[#allocation6 + $0x130] ss:$8 sps:$4 sm:$0xff]  }
 0x1a8   : > { %1355 = vmatprep.subr.bf16.mxu1 %v3425_v54  ;;  %v3470_v54 = vld [vmem:[#allocation6 + $0x124] ss:$8 sps:$4 sm:$0xff]  }
 0x1ab   : > { %1356 = vmatpush2.bf16.msra.mxu1 %v3423_v56  ;;  %v3468_v56 = vld [vmem:[#allocation6 + $0x120] ss:$8 sps:$4 sm:$0xff]  }
 0x1ac   : > { %1357 = vmatprep.subr.bf16.mxu1 %v3431_v58  ;;  %v3476_v58 = vld [vmem:[#allocation6 + $0x114] ss:$8 sps:$4 sm:$0xff]  }
 0x1af   : > { %1358 = vmatpush2.bf16.msra.mxu1 %v3429_v60  ;;  %v3474_v60 = vld [vmem:[#allocation6 + $0x110] ss:$8 sps:$4 sm:$0xff]  }
 0x1b0   : > { %1854 = vmatprep.subr.bf16.mxu1 %v3437_v62  ;;  %v3482_v62 = vld [vmem:[#allocation6 + $0x104] ss:$8 sps:$4 sm:$0xff]  }
 0x232   : > { %v3116_v4 = vpop.f32.mrf.mxu1 }
 0x233   : > { %v734_v12 = vadd.f32 %v3116_v4, %v642_v6  ;;  %v4223_v4 = vsub.s32 0, %v4217_v1 }
 0x234   : > { %v725_v5 = vpop.f32.mrf.mxu1 }
 0x235   : > { %v726_v7 = vadd.f32 %v725_v5, %v642_v6  ;;  %v772_v5 = vrot.slane %v763_v3, %v4220_v2 }
 0x236   : > { %v3117_v8 = vpop.f32.mrf.mxu1 }
 0x237   : > { %3587 = vtanh.f32 %v726_v7  ;;  %v737_v11 = vadd.f32 %v3117_v8, %v642_v6  ;;  %v768_v7 = vrot.slane %v763_v3, %v4223_v4  ;;  %v3485_v3 = vld [vmem:[#allocation6 + $0xf4] ss:$8 sps:$4 sm:$0xff]  }
 0x238   : > { %v728_v9 = vpop.f32.mrf.mxu1 }
 0x239   : > { %v729_v10 = vadd.f32 %v728_v9, %v642_v6 }
 0x23b   : > { %3589 = vtanh.f32 %v729_v10 }
 0x23c   : > { %3591 = vtanh.f32 %v737_v11 }
 0x23d   : > { %3593 = vtanh.f32 %v734_v12 }
 0x244   : > { %v3588_v13 = vpop.eup %3587 }
 0x248   : > { %v3590_v14 = vpop.eup %3589 }
 0x249   : > { %v744_v16 = vpack.c.bf16 %v3590_v14, %v3588_v13  ;;  %v3592_v20 = vpop.eup %3591 }
 0x24a   : > { %v3594_v21 = vpop.eup %3593 }
 0x24b   : > { %888 = vmatmul.mubr.bf16.vlgmr.msra.gmra.mxu0 %v744_v16  ;;  %v745_v23 = vpack.c.bf16 %v3592_v20, %v3594_v21 }
 0x24c   : > { %897 = vmatprep.mubr.bf16.mxu0 %v3970_v43  ;;  %1381 = vmatpush1.bf16.msra.mxu0 %v3342_v15  ;;  %v3410_v43 = vld [vmem:[#allocation4 + $0x18c] ss:$16 sps:$4 sm:$0xff]  }
 0x24d   : > { %1382 = vmatprep.subr.bf16.mxu0 %v3350_v17 }
 0x250   : > { %1383 = vmatpush1.bf16.msra.mxu0 %v3348_v18 }
 0x251   : > { %1384 = vmatprep.subr.bf16.mxu0 %v3356_v19 }
 0x253   : > { %898 = vmatmul.mubr.bf16.gmra.mxu0 %v745_v23 }
 0x254   : > { %1385 = vmatpush1.bf16.msra.mxu0 %v3354_v22 }
 0x255   : > { %1386 = vmatprep.subr.bf16.mxu0 %v3362_v24 }
 0x258   : > { %1387 = vmatpush1.bf16.msra.mxu0 %v3360_v25 }
 0x259   : > { %1388 = vmatprep.subr.bf16.mxu0 %v3368_v26 }
 0x25c   : > { %1389 = vmatpush1.bf16.msra.mxu0 %v3366_v27 }
 0x25d   : > { %1390 = vmatprep.subr.bf16.mxu0 %v3374_v28  ;;  %v3435_v28 = vld [vmem:[#allocation6 + $0x70] ss:$8 sps:$4 sm:$0xff]  }
 0x260   : > { %1391 = vmatpush1.bf16.msra.mxu0 %v3372_v29  ;;  %v3438_v29 = vld [vmem:[#allocation6 + $0x170] ss:$8 sps:$4 sm:$0xff]  }
 0x261   : > { %1392 = vmatprep.subr.bf16.mxu0 %v3380_v30 }
 0x264   : > { %1393 = vmatpush1.bf16.msra.mxu0 %v3378_v31  ;;  %v3443_v31 = vld [vmem:[#allocation6 + $0x64] ss:$8 sps:$4 sm:$0xff]  }
 0x265   : > { %1394 = vmatprep.subr.bf16.mxu0 %v3386_v32  ;;  %v3446_v32 = vld [vmem:[#allocation6 + $0x164] ss:$8 sps:$4 sm:$0xff]  }
 0x268   : > { %1395 = vmatpush1.bf16.msra.mxu0 %v3384_v33  ;;  %v3441_v33 = vld [vmem:[#allocation6 + $0x60] ss:$8 sps:$4 sm:$0xff]  }
 0x269   : > { %1396 = vmatprep.subr.bf16.mxu0 %v3392_v34  ;;  %v3444_v34 = vld [vmem:[#allocation6 + $0x160] ss:$8 sps:$4 sm:$0xff]  }
 0x26c   : > { %1397 = vmatpush2.bf16.msra.mxu0 %v3390_v35 }
 0x26d   : > { %1398 = vmatprep.subr.bf16.mxu0 %v3398_v36  ;;  %v3449_v36 = vld [vmem:[#allocation6 + $0x54] ss:$8 sps:$4 sm:$0xff]  }
 0x270   : > { %1399 = vmatpush2.bf16.msra.mxu0 %v3396_v37  ;;  %v3452_v37 = vld [vmem:[#allocation6 + $0x154] ss:$8 sps:$4 sm:$0xff]  }
 0x271   : > { %1400 = vmatprep.subr.bf16.mxu0 %v3404_v39 }
 0x274   : > { %1401 = vmatpush2.bf16.msra.mxu0 %v3402_v41 }
 0x275   : > { %1402 = vmatprep.subr.bf16.mxu0 %v3410_v43  ;;  %v3450_v43 = vld [vmem:[#allocation6 + $0x150] ss:$8 sps:$4 sm:$0xff]  }
 0x278   : > { %1403 = vmatpush2.bf16.msra.mxu0 %v3408_v45  ;;  %v3455_v45 = vld [vmem:[#allocation6 + $0x44] ss:$8 sps:$4 sm:$0xff]  }
 0x279   : > { %1404 = vmatprep.subr.bf16.mxu0 %v3416_v47  ;;  %v3453_v47 = vld [vmem:[#allocation6 + $0x40] ss:$8 sps:$4 sm:$0xff]  }
 0x27c   : > { %1405 = vmatpush2.bf16.msra.mxu0 %v3414_v49  ;;  %v3461_v49 = vld [vmem:[#allocation6 + $0x34] ss:$8 sps:$4 sm:$0xff]  }
 0x27d   : > { %1406 = vmatprep.subr.bf16.mxu0 %v3422_v51  ;;  %v3459_v51 = vld [vmem:[#allocation6 + $0x30] ss:$8 sps:$4 sm:$0xff]  }
 0x280   : > { %1407 = vmatpush2.bf16.msra.mxu0 %v3420_v53  ;;  %v3467_v53 = vld [vmem:[#allocation6 + $0x24] ss:$8 sps:$4 sm:$0xff]  }
 0x281   : > { %1408 = vmatprep.subr.bf16.mxu0 %v3428_v55  ;;  %v3465_v55 = vld [vmem:[#allocation6 + $0x20] ss:$8 sps:$4 sm:$0xff]  }
 0x284   : > { %1409 = vmatpush2.bf16.msra.mxu0 %v3426_v57  ;;  %v3473_v57 = vld [vmem:[#allocation6 + $0x14] ss:$8 sps:$4 sm:$0xff]  }
 0x285   : > { %1410 = vmatprep.subr.bf16.mxu0 %v3434_v59  ;;  %v3471_v59 = vld [vmem:[#allocation6 + $0x10] ss:$8 sps:$4 sm:$0xff]  }
 0x288   : > { %1411 = vmatpush2.bf16.msra.mxu0 %v3432_v61  ;;  %v3479_v61 = vld [vmem:[#allocation6 + $0x4] ss:$8 sps:$4 sm:$0xff]  }
 0x289   : > { %1907 = vmatprep.subr.bf16.mxu0 %v3440_v63  ;;  %v3477_v63 = vld [vmem:[#allocation6] ss:$8 sps:$4 sm:$0xff]  }
 0x30b   : > { %v889_v6 = vpop.f32.mrf.mxu0 }
 0x30c   : > { %v890_v12 = vadd.f32 %v889_v6, %v768_v7  ;;  %v3483_v6 = vld [vmem:[#allocation6 + $0xf0] ss:$8 sps:$4 sm:$0xff]  }
 0x30d   : > { %v891_v8 = vpop.f32.mrf.mxu0 }
 0x30e   : > { %v892_v9 = vadd.f32 %v891_v8, %v772_v5  ;;  %v3491_v8 = vld [vmem:[#allocation6 + $0xe4] ss:$8 sps:$4 sm:$0xff]  }
 0x30f   : > { %v893_v10 = vpop.f32.mrf.mxu0 }
 0x310   : > { %v894_v11 = vadd.f32 %v893_v10, %v768_v7  ;;  %3595 = vtanh.f32 %v892_v9  ;;  %v3494_v9 = vld [vmem:[#allocation6 + $0x1e4] ss:$8 sps:$4 sm:$0xff]   ;;  %v3489_v10 = vld [vmem:[#allocation6 + $0xe0] ss:$8 sps:$4 sm:$0xff]  }
 0x311   : > { %v895_v13 = vpop.f32.mrf.mxu0 }
 0x312   : > { %v896_v14 = vadd.f32 %v895_v13, %v772_v5  ;;  %3597 = vtanh.f32 %v894_v11  ;;  %v3492_v11 = vld [vmem:[#allocation6 + $0x1e0] ss:$8 sps:$4 sm:$0xff]   ;;  %v3500_v13 = vld [vmem:[#allocation6 + $0x1d4] ss:$8 sps:$4 sm:$0xff]  }
 0x313   : > { %v899_v15 = vpop.f32.mrf.mxu0 }
 0x314   : > { %3599 = vtanh.f32 %v896_v14  ;;  %v900_v20 = vadd.f32 %v899_v15, %v768_v7  ;;  %v3495_v14 = vld [vmem:[#allocation6 + $0xd0] ss:$8 sps:$4 sm:$0xff]  }
 0x315   : > { %3601 = vtanh.f32 %v890_v12  ;;  %v901_v16 = vpop.f32.mrf.mxu0  ;;  %v3497_v12 = vld [vmem:[#allocation6 + $0xd4] ss:$8 sps:$4 sm:$0xff]   ;;  %v3498_v15 = vld [vmem:[#allocation6 + $0x1d0] ss:$8 sps:$4 sm:$0xff]  }
 0x316   : > { %v902_v17 = vadd.f32 %v901_v16, %v772_v5  ;;  %v3503_v16 = vld [vmem:[#allocation6 + $0xc4] ss:$8 sps:$4 sm:$0xff]  }
 0x317   : > { %v903_v18 = vpop.f32.mrf.mxu0 }
 0x318   : > { %v904_v19 = vadd.f32 %v903_v18, %v768_v7  ;;  %3603 = vtanh.f32 %v902_v17  ;;  %v3486_v7 = vld [vmem:[#allocation6 + $0x1f0] ss:$8 sps:$4 sm:$0xff]   ;;  %v3506_v17 = vld [vmem:[#allocation6 + $0x1c4] ss:$8 sps:$4 sm:$0xff]   ;;  %v3501_v18 = vld [vmem:[#allocation6 + $0xc0] ss:$8 sps:$4 sm:$0xff]  }
 0x319   : > { %v905_v21 = vpop.f32.mrf.mxu0 }
 0x31a   : > { %v906_v22 = vadd.f32 %v905_v21, %v772_v5  ;;  %3605 = vtanh.f32 %v904_v19  ;;  %v3488_v5 = vld [vmem:[#allocation6 + $0x1f4] ss:$8 sps:$4 sm:$0xff]   ;;  %v3504_v19 = vld [vmem:[#allocation6 + $0x1c0] ss:$8 sps:$4 sm:$0xff]  }
 0x31b   : > { %v3512_v21 = vld [vmem:[#allocation6 + $0x1b4] ss:$8 sps:$4 sm:$0xff]  }
 0x31c   : > { %3607 = vtanh.f32 %v906_v22  ;;  %v3507_v22 = vld [vmem:[#allocation6 + $0xb0] ss:$8 sps:$4 sm:$0xff]  }
 0x31d   : > { %3609 = vtanh.f32 %v900_v20  ;;  %v3596_v23 = vpop.eup %3595  ;;  %v3509_v20 = vld [vmem:[#allocation6 + $0xb4] ss:$8 sps:$4 sm:$0xff]  }
 0x31f   : > { %v3598_v24 = vpop.eup %3597 }
 0x321   : > { %v3600_v25 = vpop.eup %3599 }
 0x322   : > { %v3602_v26 = vpop.eup %3601  ;;  %v917_v27 = vpack.c.bf16 %v3600_v25, %v3596_v23  ;;  %v3510_v23 = vld [vmem:[#allocation6 + $0x1b0] ss:$8 sps:$4 sm:$0xff]   ;;  %v3518_v25 = vld [vmem:[#allocation6 + $0x1a4] ss:$8 sps:$4 sm:$0xff]  }
 0x323   : > { %v916_v30 = vpack.c.bf16 %v3598_v24, %v3602_v26  ;;  %v3515_v24 = vld [vmem:[#allocation6 + $0xa4] ss:$8 sps:$4 sm:$0xff]   ;;  %v3513_v26 = vld [vmem:[#allocation6 + $0xa0] ss:$8 sps:$4 sm:$0xff]  }
 0x324   : > { %1359 = vmatprep.mubr.bf16.mxu1 %v917_v27  ;;  %1412 = vmatprep.mubr.bf16.mxu0 %v917_v27  ;;  %v3516_v27 = vld [vmem:[#allocation6 + $0x1a0] ss:$8 sps:$4 sm:$0xff]  }
 0x325   : > { %1360 = vmatmul.mubr.bf16.vlgmr.msra.gmra.mxu1 %v916_v30  ;;  %1413 = vmatmul.mubr.bf16.vlgmr.msra.gmra.mxu0 %v916_v30  ;;  %v3604_v35 = vpop.eup %3603  ;;  %v3519_v30 = vld [vmem:[#allocation6 + $0x90] ss:$8 sps:$4 sm:$0xff]  }
 0x326   : > { %1855 = vmatpush1.bf16.msra.mxu1 %v3435_v28  ;;  %1908 = vmatpush1.bf16.msra.mxu0 %v3438_v29  ;;  %v3521_v28 = vld [vmem:[#allocation6 + $0x94] ss:$8 sps:$4 sm:$0xff]  }
 0x327   : > { %1856 = vmatprep.subr.bf16.mxu1 %v3443_v31  ;;  %1909 = vmatprep.subr.bf16.mxu0 %v3446_v32  ;;  %v3606_v38 = vpop.eup %3605  ;;  %v3524_v29 = vld [vmem:[#allocation6 + $0x194] ss:$8 sps:$4 sm:$0xff]   ;;  %v3522_v31 = vld [vmem:[#allocation6 + $0x190] ss:$8 sps:$4 sm:$0xff]   ;;  %v3527_v32 = vld [vmem:[#allocation6 + $0x84] ss:$8 sps:$4 sm:$0xff]  }
 0x329   : > { %v3608_v39 = vpop.eup %3607 }
 0x32a   : > { %v3610_v40 = vpop.eup %3609  ;;  %v919_v41 = vpack.c.bf16 %v3608_v39, %v3604_v35  ;;  %1857 = vmatpush1.bf16.msra.mxu1 %v3441_v33  ;;  %1910 = vmatpush1.bf16.msra.mxu0 %v3444_v34  ;;  %v3530_v33 = vld [vmem:[#allocation6 + $0x184] ss:$8 sps:$4 sm:$0xff]   ;;  %v3525_v34 = vld [vmem:[#allocation6 + $0x80] ss:$8 sps:$4 sm:$0xff]  }
 0x32b   : > { %v918_v44 = vpack.c.bf16 %v3606_v38, %v3610_v40  ;;  %1858 = vmatprep.subr.bf16.mxu1 %v3449_v36  ;;  %1911 = vmatprep.subr.bf16.mxu0 %v3452_v37  ;;  %v3528_v35 = vld [vmem:[#allocation6 + $0x180] ss:$8 sps:$4 sm:$0xff]   ;;  %v3531_v36 = vld [vmem:[#allocation7 + $0x78] sm:$0xff]   ;;  %v1001_v38 = vsub.s32 3, %v4217_v1  ;;  %v997_v40 = vsub.s32 2, %v4217_v1 }
 0x32c   : > { %1369 = vmatprep.mubr.bf16.mxu1 %v919_v41  ;;  %1422 = vmatprep.mubr.bf16.mxu0 %v919_v41  ;;  %v985_v37 = vld [vmem:[#allocation15 + $0x3] ss:$8 sm:$0xf] }
 0x32d   : > { %1370 = vmatmul.mubr.bf16.gmra.mxu1 %v918_v44  ;;  %1423 = vmatmul.mubr.bf16.gmra.mxu0 %v918_v44  ;;  %v990_v39 = vrot.slane %v985_v37, %v4223_v4  ;;  %v994_v41 = vrot.slane %v985_v37, %v4220_v2 }
 0x32e   : > { %1859 = vmatpush1.bf16.msra.mxu1 %v3447_v42  ;;  %1912 = vmatpush1.bf16.msra.mxu0 %v3450_v43  ;;  %v1002_v42 = vrot.slane %v985_v37, %v1001_v38 }
 0x32f   : > { %1860 = vmatprep.subr.bf16.mxu1 %v3455_v45  ;;  %1913 = vmatprep.subr.bf16.mxu0 %v3458_v46 }
 0x332   : > { %1861 = vmatpush1.bf16.msra.mxu1 %v3453_v47  ;;  %1914 = vmatpush1.bf16.msra.mxu0 %v3456_v48  ;;  %v998_v48 = vrot.slane %v985_v37, %v997_v40  ;;  %v3534_v40 = vld [vmem:[#allocation7 + $0x30] sm:$0xff]  }
 0x333   : > { %1862 = vmatprep.subr.bf16.mxu1 %v3461_v49  ;;  %1915 = vmatprep.subr.bf16.mxu0 %v3464_v50 }
 0x336   : > { %1863 = vmatpush1.bf16.msra.mxu1 %v3459_v51  ;;  %1916 = vmatpush1.bf16.msra.mxu0 %v3462_v52 }
 0x337   : > { %1864 = vmatprep.subr.bf16.mxu1 %v3467_v53  ;;  %1917 = vmatprep.subr.bf16.mxu0 %v3470_v54 }
 0x33a   : > { %1865 = vmatpush1.bf16.msra.mxu1 %v3465_v55  ;;  %1918 = vmatpush1.bf16.msra.mxu0 %v3468_v56 }
 0x33b   : > { %1866 = vmatprep.subr.bf16.mxu1 %v3473_v57  ;;  %1919 = vmatprep.subr.bf16.mxu0 %v3476_v58 }
 0x33e   : > { %1867 = vmatpush1.bf16.msra.mxu1 %v3471_v59  ;;  %1920 = vmatpush1.bf16.msra.mxu0 %v3474_v60 }
 0x33f   : > { %1868 = vmatprep.subr.bf16.mxu1 %v3479_v61  ;;  %1921 = vmatprep.subr.bf16.mxu0 %v3482_v62 }
 0x342   : > { %1869 = vmatpush1.bf16.msra.mxu1 %v3477_v63  ;;  %1922 = vmatpush1.bf16.msra.mxu0 %v3480_v0 }
 0x343   : > { %1870 = vmatprep.subr.bf16.mxu1 %v3485_v3  ;;  %1923 = vmatprep.subr.bf16.mxu0 %v3488_v5 }
 0x346   : > { %1871 = vmatpush2.bf16.msra.mxu1 %v3483_v6  ;;  %1924 = vmatpush2.bf16.msra.mxu0 %v3486_v7 }
 0x347   : > { %1872 = vmatprep.subr.bf16.mxu1 %v3491_v8  ;;  %1925 = vmatprep.subr.bf16.mxu0 %v3494_v9 }
 0x34a   : > { %1873 = vmatpush2.bf16.msra.mxu1 %v3489_v10  ;;  %1926 = vmatpush2.bf16.msra.mxu0 %v3492_v11 }
 0x34b   : > { %1874 = vmatprep.subr.bf16.mxu1 %v3497_v12  ;;  %1927 = vmatprep.subr.bf16.mxu0 %v3500_v13 }
 0x34e   : > { %1875 = vmatpush2.bf16.msra.mxu1 %v3495_v14  ;;  %1928 = vmatpush2.bf16.msra.mxu0 %v3498_v15 }
 0x34f   : > { %1876 = vmatprep.subr.bf16.mxu1 %v3503_v16  ;;  %1929 = vmatprep.subr.bf16.mxu0 %v3506_v17 }
 0x352   : > { %1877 = vmatpush2.bf16.msra.mxu1 %v3501_v18  ;;  %1930 = vmatpush2.bf16.msra.mxu0 %v3504_v19 }
 0x353   : > { %1878 = vmatprep.subr.bf16.mxu1 %v3509_v20  ;;  %1931 = vmatprep.subr.bf16.mxu0 %v3512_v21 }
 0x356   : > { %1879 = vmatpush2.bf16.msra.mxu1 %v3507_v22  ;;  %1932 = vmatpush2.bf16.msra.mxu0 %v3510_v23  ;;  %v3532_v22 = vld [vmem:[#allocation7 + $0x38] sm:$0xff]  }
 0x357   : > { %1880 = vmatprep.subr.bf16.mxu1 %v3515_v24  ;;  %1933 = vmatprep.subr.bf16.mxu0 %v3518_v25 }
 0x35a   : > { %1881 = vmatpush2.bf16.msra.mxu1 %v3513_v26  ;;  %1934 = vmatpush2.bf16.msra.mxu0 %v3516_v27 }
 0x35b   : > { %1882 = vmatprep.subr.bf16.mxu1 %v3521_v28  ;;  %1935 = vmatprep.subr.bf16.mxu0 %v3524_v29 }
 0x35e   : > { %1883 = vmatpush2.bf16.msra.mxu1 %v3519_v30  ;;  %1936 = vmatpush2.bf16.msra.mxu0 %v3522_v31 }
 0x35f   : > { %1884 = vmatprep.subr.bf16.mxu1 %v3527_v32  ;;  %1937 = vmatprep.subr.bf16.mxu0 %v3530_v33 }
 0x362   : > { %1885 = vmatpush2.bf16.msra.mxu1 %v3525_v34  ;;  %1938 = vmatpush2.bf16.msra.mxu0 %v3528_v35 }
 0x363   : > { %3024 = vmatprep.subr.bf16.mxu1 %v3531_v36 }
 0x3e5   : > { %v1361_v43 = vpop.f32.mrf.mxu1  ;;  %v1414_v44 = vpop.f32.mrf.mxu0 }
 0x3e6   : > { %v1362_v45 = vadd.f32 %v1361_v43, %v990_v39  ;;  %v1415_v56 = vadd.f32 %v1414_v44, %v998_v48  ;;  %v3537_v43 = vld [vmem:[#allocation7 + $0x60] sm:$0xff]  }
 0x3e7   : > { %v1363_v46 = vpop.f32.mrf.mxu1  ;;  %v1416_v47 = vpop.f32.mrf.mxu0  ;;  %v3538_v44 = vld [vmem:[#allocation7 + $0x20] sm:$0xff]  }
 0x3e8   : > { %v1364_v49 = vadd.f32 %v1363_v46, %v994_v41  ;;  %v1417_v50 = vadd.f32 %v1416_v47, %v1002_v42  ;;  %3611 = vtanh.f32 %v1362_v45  ;;  %v3539_v45 = vld [vmem:[#allocation7 + $0x58] sm:$0xff]   ;;  %v3541_v47 = vld [vmem:[#allocation7 + $0x50] sm:$0xff]  }
 0x3e9   : > { %v1365_v51 = vpop.f32.mrf.mxu1  ;;  %v1418_v52 = vpop.f32.mrf.mxu0  ;;  %v3540_v46 = vld [vmem:[#allocation7 + $0x18] sm:$0xff]  }
 0x3ea   : > { %3613 = vtanh.f32 %v1364_v49  ;;  %v1366_v53 = vadd.f32 %v1365_v51, %v990_v39  ;;  %v1419_v54 = vadd.f32 %v1418_v52, %v998_v48  ;;  %v3543_v49 = vld [vmem:[#allocation7 + $0x48] sm:$0xff]   ;;  %v3545_v51 = vld [vmem:[#allocation7 + $0x40] sm:$0xff]  }
 0x3eb   : > { %3615 = vtanh.f32 %v1417_v50  ;;  %v1367_v55 = vpop.f32.mrf.mxu1  ;;  %v1420_v1 = vpop.f32.mrf.mxu0  ;;  %v3544_v50 = vld [vmem:[#allocation7 + $0x8] sm:$0xff]   ;;  %v3546_v52 = vld [vmem:[#allocation7] sm:$0xff]  }
 0x3ec   : > { %3617 = vtanh.f32 %v1366_v53  ;;  %v1368_v57 = vadd.f32 %v1367_v55, %v994_v41  ;;  %v1421_v58 = vadd.f32 %v1420_v1, %v1002_v42  ;;  %v1522_v53 = vld [vmem:[#allocation15 + $0x4] ss:$8 sm:$0x3] }
 0x3ed   : > { %3619 = vtanh.f32 %v1419_v54  ;;  %v1371_v59 = vpop.f32.mrf.mxu1  ;;  %v1424_v60 = vpop.f32.mrf.mxu0  ;;  %v1531_v54 = vrot.slane %v1522_v53, %v4220_v2  ;;  %v1527_v55 = vrot.slane %v1522_v53, %v4223_v4 }
 0x3ee   : > { %3621 = vtanh.f32 %v1368_v57  ;;  %v1372_v61 = vadd.f32 %v1371_v59, %v990_v39  ;;  %v1425_v11 = vadd.f32 %v1424_v60, %v998_v48 }
 0x3ef   : > { %3623 = vtanh.f32 %v1421_v58  ;;  %v1373_v62 = vpop.f32.mrf.mxu1  ;;  %v1426_v63 = vpop.f32.mrf.mxu0 }
 0x3f0   : > { %3625 = vtanh.f32 %v1415_v56  ;;  %v1374_v0 = vadd.f32 %v1373_v62, %v994_v41  ;;  %v1427_v3 = vadd.f32 %v1426_v63, %v1002_v42 }
 0x3f1   : > { %3627 = vtanh.f32 %v1372_v61  ;;  %v1375_v5 = vpop.f32.mrf.mxu1  ;;  %v1428_v6 = vpop.f32.mrf.mxu0 }
 0x3f2   : > { %3629 = vtanh.f32 %v1374_v0  ;;  %v1376_v7 = vadd.f32 %v1375_v5, %v990_v39  ;;  %v1429_v8 = vadd.f32 %v1428_v6, %v998_v48  ;;  %v3533_v39 = vld [vmem:[#allocation7 + $0x70] sm:$0xff]  }
 0x3f3   : > { %3631 = vtanh.f32 %v1427_v3  ;;  %v1377_v9 = vpop.f32.mrf.mxu1  ;;  %v1430_v10 = vpop.f32.mrf.mxu0  ;;  %v3542_v48 = vld [vmem:[#allocation7 + $0x10] sm:$0xff]  }
 0x3f4   : > { %3633 = vtanh.f32 %v1376_v7  ;;  %v1378_v12 = vadd.f32 %v1377_v9, %v994_v41  ;;  %v1431_v13 = vadd.f32 %v1430_v10, %v1002_v42  ;;  %v3535_v41 = vld [vmem:[#allocation7 + $0x68] sm:$0xff]  }
 0x3f5   : > { %3635 = vtanh.f32 %v1429_v8  ;;  %v3612_v14 = vpop.eup %3611  ;;  %v3536_v42 = vld [vmem:[#allocation7 + $0x28] sm:$0xff]  }
 0x3f6   : > { %3637 = vtanh.f32 %v1378_v12 }
 0x3f7   : > { %v3614_v15 = vpop.eup %3613  ;;  %3639 = vtanh.f32 %v1431_v13 }
 0x3f8   : > { %v3616_v16 = vpop.eup %3615  ;;  %3641 = vtanh.f32 %v1425_v11 }
 0x3f9   : > { %v3618_v17 = vpop.eup %3617 }
 0x3fa   : > { %v3620_v18 = vpop.eup %3619  ;;  %v1449_v25 = vpack.c.bf16 %v3618_v17, %v3612_v14 }
 0x3fb   : > { %v3622_v19 = vpop.eup %3621 }
 0x3fc   : > { %v3624_v20 = vpop.eup %3623  ;;  %v1450_v21 = vpack.c.bf16 %v3622_v19, %v3614_v15 }
 0x3fd   : > { %v3626_v23 = vpop.eup %3625  ;;  %v1452_v24 = vpack.c.bf16 %v3624_v20, %v3616_v16 }
 0x3fe   : > { %v3628_v26 = vpop.eup %3627  ;;  %1886 = vmatprep.mubr.bf16.mxu1 %v1450_v21  ;;  %v1451_v27 = vpack.c.bf16 %v3620_v18, %v3626_v23 }
 0x3ff   : > { %v3630_v28 = vpop.eup %3629  ;;  %1939 = vmatprep.mubr.bf16.mxu0 %v1452_v24  ;;  %1887 = vmatmul.mubr.bf16.vlgmr.msra.gmra.mxu1 %v1449_v25 }
 0x400   : > { %v3632_v29 = vpop.eup %3631  ;;  %1940 = vmatmul.mubr.bf16.vlgmr.msra.gmra.mxu0 %v1451_v27  ;;  %3025 = vmatpush3.bf16.msra.mxu1 %v3532_v22 }
 0x401   : > { %v3634_v30 = vpop.eup %3633  ;;  %3026 = vmatprep.subr.bf16.mxu1 %v3533_v39  ;;  %v3550_v39 = vld [vmem:[#allocation9 + $0x20] sm:$0xff]  }
 0x402   : > { %v3636_v31 = vpop.eup %3635  ;;  %v1453_v37 = vpack.c.bf16 %v3634_v30, %v3628_v26 }
 0x403   : > { %v3638_v32 = vpop.eup %3637 }
 0x404   : > { %v3640_v33 = vpop.eup %3639  ;;  %v1454_v34 = vpack.c.bf16 %v3638_v32, %v3630_v28  ;;  %3027 = vmatpush3.bf16.msra.mxu1 %v3534_v40  ;;  %v3551_v40 = vld [vmem:[#allocation9 + $0x18] sm:$0xff]  }
 0x405   : > { %v3642_v35 = vpop.eup %3641  ;;  %v1456_v36 = vpack.c.bf16 %v3640_v33, %v3632_v29  ;;  %3028 = vmatprep.subr.bf16.mxu1 %v3535_v41  ;;  %v3552_v41 = vld [vmem:[#allocation9 + $0x10] sm:$0xff]  }
 0x406   : > { %1896 = vmatprep.mubr.bf16.mxu1 %v1454_v34  ;;  %v1455_v38 = vpack.c.bf16 %v3636_v31, %v3642_v35 }
 0x407   : > { %1949 = vmatprep.mubr.bf16.mxu0 %v1456_v36  ;;  %1897 = vmatmul.mubr.bf16.gmra.mxu1 %v1453_v37  ;;  %v3547_v36 = vld [vmem:[#allocation9 + $0x38] sm:$0xff]   ;;  %v3548_v37 = vld [vmem:[#allocation9 + $0x30] sm:$0xff]  }
 0x408   : > { %1950 = vmatmul.mubr.bf16.gmra.mxu0 %v1455_v38  ;;  %3029 = vmatpush3.bf16.msra.mxu1 %v3536_v42  ;;  %v3549_v38 = vld [vmem:[#allocation9 + $0x28] sm:$0xff]  }
 0x409   : > { %3030 = vmatprep.subr.bf16.mxu1 %v3537_v43  ;;  %3118 = vmatprep.subr.bf16.mxu0 %v3547_v36  ;;  %v3553_v42 = vld [vmem:[#allocation9 + $0x8] sm:$0xff]   ;;  %v3554_v43 = vld [vmem:[#allocation9] sm:$0xff]  }
 0x40a   : > { %3119 = vmatpush3.bf16.msra.mxu0 %v3547_v36 }
 0x40b   : > { %3120 = vmatprep.subr.bf16.mxu0 %v3548_v37 }
 0x40c   : > { %3031 = vmatpush3.bf16.msra.mxu1 %v3538_v44  ;;  %v3555_v44 = vld [vmem:[#allocation10 + $0x38] sm:$0xff]  }
 0x40d   : > { %3032 = vmatprep.subr.bf16.mxu1 %v3539_v45  ;;  %v3556_v45 = vld [vmem:[#allocation10 + $0x30] sm:$0xff]  }
 0x40e   : > { %3121 = vmatpush3.bf16.msra.mxu0 %v3548_v37  ;;  %v2292_v37 = vld [vmem:[#allocation15 + $0x7] ss:$0 sm:$0xff] }
 0x40f   : > { %3122 = vmatprep.subr.bf16.mxu0 %v3549_v38 }
 0x410   : > { %3033 = vmatpush3.bf16.msra.mxu1 %v3540_v46 }
 0x411   : > { %3034 = vmatprep.subr.bf16.mxu1 %v3541_v47 }
 0x412   : > { %3123 = vmatpush3.bf16.msra.mxu0 %v3549_v38 }
 0x413   : > { %3124 = vmatprep.subr.bf16.mxu0 %v3550_v39 }
 0x414   : > { %3035 = vmatpush3.bf16.msra.mxu1 %v3542_v48  ;;  %v2004_v48 = vld [vmem:[#allocation15 + $0x5] ss:$0 sm:$0xff] }
 0x415   : > { %3036 = vmatprep.subr.bf16.mxu1 %v3543_v49 }
 0x416   : > { %3125 = vmatpush3.bf16.msra.mxu0 %v3550_v39 }
 0x417   : > { %3126 = vmatprep.subr.bf16.mxu0 %v3551_v40 }
 0x418   : > { %3037 = vmatpush3.bf16.msra.mxu1 %v3544_v50 }
 0x419   : > { %3038 = vmatprep.subr.bf16.mxu1 %v3545_v51 }
 0x41a   : > { %3127 = vmatpush3.bf16.msra.mxu0 %v3551_v40 }
 0x41b   : > { %3128 = vmatprep.subr.bf16.mxu0 %v3552_v41 }
 0x41c   : > { %3039 = vmatpush3.bf16.msra.mxu1 %v3546_v52 }
 0x41d   : > { %3138 = vmatprep.subr.bf16.mxu1 %v3555_v44 }
 0x41e   : > { %3129 = vmatpush3.bf16.msra.mxu0 %v3552_v41 }
 0x41f   : > { %3130 = vmatprep.subr.bf16.mxu0 %v3553_v42 }
 0x422   : > { %3131 = vmatpush3.bf16.msra.mxu0 %v3553_v42 }
 0x423   : > { %3132 = vmatprep.subr.bf16.mxu0 %v3554_v43 }
 0x426   : > { %3133 = vmatpush3.bf16.msra.mxu0 %v3554_v43 }
 0x4bf   : > { %v1888_v1 = vpop.f32.mrf.mxu1 }
 0x4c0   : > { %v1941_v56 = vpop.f32.mrf.mxu0  ;;  %v1889_v60 = vadd.f32 %v1888_v1, %v1527_v55 }
 0x4c1   : > { %v1890_v57 = vpop.f32.mrf.mxu1 }
 0x4c2   : > { %v1891_v58 = vadd.f32 %v1890_v57, %v1531_v54  ;;  %v1943_v59 = vpop.f32.mrf.mxu0  ;;  %v1942_v8 = vadd.f32 %v1941_v56, %v1889_v60 }
 0x4c3   : > { %v1892_v61 = vpop.f32.mrf.mxu1 }
 0x4c4   : > { %v1944_v62 = vadd.f32 %v1943_v59, %v1891_v58  ;;  %v1893_v63 = vadd.f32 %v1892_v61, %v1527_v55  ;;  %v1945_v0 = vpop.f32.mrf.mxu0 }
 0x4c5   : > { %v1894_v3 = vpop.f32.mrf.mxu1 }
 0x4c6   : > { %v1946_v5 = vadd.f32 %v1945_v0, %v1893_v63  ;;  %v1895_v6 = vadd.f32 %v1894_v3, %v1531_v54  ;;  %v1947_v7 = vpop.f32.mrf.mxu0  ;;  %3643 = vtanh.f32 %v1944_v62 }
 0x4c7   : > { %v1898_v9 = vpop.f32.mrf.mxu1 }
 0x4c8   : > { %v1948_v2 = vadd.f32 %v1947_v7, %v1895_v6  ;;  %v1951_v10 = vpop.f32.mrf.mxu0  ;;  %3645 = vtanh.f32 %v1946_v5  ;;  %v1899_v13 = vadd.f32 %v1898_v9, %v1527_v55  ;;  %v3557_v7 = vld [vmem:[#allocation10 + $0x28] sm:$0xff]   ;;  %v3559_v9 = vld [vmem:[#allocation10 + $0x18] sm:$0xff]  }
 0x4c9   : > { %v1900_v4 = vpop.f32.mrf.mxu1 }
 0x4ca   : > { %3647 = vtanh.f32 %v1948_v2  ;;  %v1901_v11 = vadd.f32 %v1900_v4, %v1531_v54  ;;  %v1953_v12 = vpop.f32.mrf.mxu0  ;;  %v1952_v21 = vadd.f32 %v1951_v10, %v1899_v13  ;;  %v3560_v2 = vld [vmem:[#allocation10 + $0x10] sm:$0xff]   ;;  %v3561_v10 = vld [vmem:[#allocation10 + $0x8] sm:$0xff]   ;;  %v3562_v4 = vld [vmem:[#allocation10] sm:$0xff]  }
 0x4cb   : > { %3649 = vtanh.f32 %v1942_v8  ;;  %v1902_v14 = vpop.f32.mrf.mxu1  ;;  %v3558_v8 = vld [vmem:[#allocation10 + $0x20] sm:$0xff]  }
 0x4cc   : > { %v1954_v15 = vadd.f32 %v1953_v12, %v1901_v11  ;;  %v1903_v16 = vadd.f32 %v1902_v14, %v1527_v55  ;;  %v1955_v17 = vpop.f32.mrf.mxu0  ;;  %v3563_v11 = vld [vmem:[#allocation12 + $0x38] sm:$0xff]   ;;  %v3564_v12 = vld [vmem:[#allocation12 + $0x30] sm:$0xff]   ;;  %v2172_v14 = vld [vmem:[#allocation15 + $0x6] ss:$0 sm:$0xff] }
 0x4cd   : > { %v1904_v18 = vpop.f32.mrf.mxu1  ;;  %3158 = vmatprep.subr.bf16.mxu0 %v3563_v11 }
 0x4ce   : > { %v1956_v19 = vadd.f32 %v1955_v17, %v1903_v16  ;;  %v1905_v20 = vadd.f32 %v1904_v18, %v1531_v54  ;;  %v1957_v22 = vpop.f32.mrf.mxu0  ;;  %3651 = vtanh.f32 %v1954_v15 }
 0x4d0   : > { %v1958_v23 = vadd.f32 %v1957_v22, %v1905_v20  ;;  %3653 = vtanh.f32 %v1956_v19 }
 0x4d2   : > { %3655 = vtanh.f32 %v1958_v23 }
 0x4d3   : > { %3657 = vtanh.f32 %v1952_v21  ;;  %v3644_v24 = vpop.eup %3643 }
 0x4d5   : > { %v3646_v25 = vpop.eup %3645 }
 0x4d7   : > { %v3648_v26 = vpop.eup %3647 }
 0x4d8   : > { %v3650_v27 = vpop.eup %3649  ;;  %v1969_v28 = vpack.c.bf16 %v3648_v26, %v3644_v24 }
 0x4d9   : > { %v1968_v29 = vpack.c.bf16 %v3646_v25, %v3650_v27 }
 0x4da   : > { %2133 = vmatprep.mubr.bf16.mxu1 %v1969_v28  ;;  %v3565_v28 = vld [vmem:[#allocation12 + $0x28] sm:$0xff]  }
 0x4db   : > { %2134 = vmatmul.mubr.bf16.vlgmr.msra.gmra.mxu1 %v1968_v29  ;;  %v3652_v30 = vpop.eup %3651  ;;  %v3566_v29 = vld [vmem:[#allocation12 + $0x20] sm:$0xff]  }
 0x4dc   : > { %3139 = vmatpush3.bf16.msra.mxu1 %v3555_v44 }
 0x4dd   : > { %v3654_v31 = vpop.eup %3653  ;;  %3140 = vmatprep.subr.bf16.mxu1 %v3556_v45 }
 0x4df   : > { %v3656_v32 = vpop.eup %3655 }
 0x4e0   : > { %v3658_v33 = vpop.eup %3657  ;;  %v1971_v34 = vpack.c.bf16 %v3656_v32, %v3652_v30  ;;  %3141 = vmatpush3.bf16.msra.mxu1 %v3556_v45  ;;  %v3567_v30 = vld [vmem:[#allocation12 + $0x18] sm:$0xff]   ;;  %v3569_v32 = vld [vmem:[#allocation12 + $0x8] sm:$0xff]  }
 0x4e1   : > { %v1970_v35 = vpack.c.bf16 %v3654_v31, %v3658_v33  ;;  %3142 = vmatprep.subr.bf16.mxu1 %v3557_v7  ;;  %v3568_v31 = vld [vmem:[#allocation12 + $0x10] sm:$0xff]   ;;  %v3570_v33 = vld [vmem:[#allocation12] sm:$0xff]  }
 0x4e2   : > { %2141 = vmatprep.mubr.bf16.mxu1 %v1971_v34  ;;  %v3571_v34 = vld [vmem:[#allocation13 + $0x38] sm:$0xff]  }
 0x4e3   : > { %2142 = vmatmul.mubr.bf16.gmra.mxu1 %v1970_v35  ;;  %v3572_v35 = vld [vmem:[#allocation13 + $0x30] sm:$0xff]  }
 0x4e4   : > { %3143 = vmatpush3.bf16.msra.mxu1 %v3557_v7 }
 0x4e5   : > { %3144 = vmatprep.subr.bf16.mxu1 %v3558_v8 }
 0x4e8   : > { %3145 = vmatpush3.bf16.msra.mxu1 %v3558_v8 }
 0x4e9   : > { %3146 = vmatprep.subr.bf16.mxu1 %v3559_v9 }
 0x4ec   : > { %3147 = vmatpush3.bf16.msra.mxu1 %v3559_v9 }
 0x4ed   : > { %3148 = vmatprep.subr.bf16.mxu1 %v3560_v2 }
 0x4f0   : > { %3149 = vmatpush3.bf16.msra.mxu1 %v3560_v2 }
 0x4f1   : > { %3150 = vmatprep.subr.bf16.mxu1 %v3561_v10 }
 0x4f4   : > { %3151 = vmatpush3.bf16.msra.mxu1 %v3561_v10  ;;  %v2532_v10 = vld [vmem:[#allocation15 + $0x21] ss:$0 sm:$0xff] }
 0x4f5   : > { %3152 = vmatprep.subr.bf16.mxu1 %v3562_v4 }
 0x4f8   : > { %3153 = vmatpush3.bf16.msra.mxu1 %v3562_v4 }
 0x4f9   : > { %3178 = vmatprep.subr.bf16.mxu1 %v3571_v34 }
 0x59b   : > { %v3040_v46 = vpop.f32.mrf.mxu1 }
 0x59d   : > { %v3041_v47 = vpop.f32.mrf.mxu1 }
 0x59e   : > { %v3042_v49 = vadd.f32 %v3041_v47, %v3040_v46 }
 0x59f   : > { %v3043_v50 = vpop.f32.mrf.mxu1 }
 0x5a0   : > { %v2136_v51 = vadd.f32 %v3042_v49, %v2004_v48 }
 0x5a1   : > { %v3044_v52 = vpop.f32.mrf.mxu1 }
 0x5a2   : > { %v3045_v53 = vadd.f32 %v3044_v52, %v3043_v50  ;;  %3659 = vtanh.f32 %v2136_v51  ;;  %v3573_v51 = vld [vmem:[#allocation13 + $0x28] sm:$0xff]   ;;  %v3574_v52 = vld [vmem:[#allocation13 + $0x20] sm:$0xff]  }
 0x5a3   : > { %v3046_v54 = vpop.f32.mrf.mxu1 }
 0x5a4   : > { %v2139_v55 = vadd.f32 %v3045_v53, %v2004_v48  ;;  %v3575_v53 = vld [vmem:[#allocation13 + $0x18] sm:$0xff]  }
 0x5a5   : > { %v3047_v1 = vpop.f32.mrf.mxu1 }
 0x5a6   : > { %3661 = vtanh.f32 %v2139_v55  ;;  %v3048_v56 = vadd.f32 %v3047_v1, %v3046_v54  ;;  %v3576_v54 = vld [vmem:[#allocation13 + $0x10] sm:$0xff]   ;;  %v3577_v55 = vld [vmem:[#allocation13 + $0x8] sm:$0xff]   ;;  %v3578_v1 = vld [vmem:[#allocation13] sm:$0xff]  }
 0x5a7   : > { %v3049_v57 = vpop.f32.mrf.mxu1 }
 0x5a8   : > { %v2144_v58 = vadd.f32 %v3048_v56, %v2004_v48 }
 0x5a9   : > { %v3050_v59 = vpop.f32.mrf.mxu1 }
 0x5aa   : > { %v3051_v60 = vadd.f32 %v3050_v59, %v3049_v57  ;;  %3663 = vtanh.f32 %v2144_v58  ;;  %v2412_v57 = vld [vmem:[#allocation15 + $0x20] ss:$0 sm:$0xff] }
 0x5ac   : > { %v2147_v61 = vadd.f32 %v3051_v60, %v2004_v48 }
 0x5ae   : > { %3665 = vtanh.f32 %v2147_v61 }
 0x5af   : > { %v3660_v62 = vpop.eup %3659 }
 0x5b3   : > { %v3662_v63 = vpop.eup %3661 }
 0x5b4   : > { %v2154_v0 = vpack.c.bf16 %v3662_v63, %v3660_v62 }
 0x5b6   : > { %3134 = vmatprep.mubr.bf16.mxu0 %v2154_v0 }
 0x5b7   : > { %v3664_v3 = vpop.eup %3663 }
 0x5bb   : > { %v3666_v5 = vpop.eup %3665 }
 0x5bc   : > { %v2155_v6 = vpack.c.bf16 %v3666_v5, %v3664_v3 }
 0x5be   : > { %3135 = vmatmul.mubr.bf16.vlgmr.msra.gmra.mxu0 %v2155_v6 }
 0x5bf   : > { %3159 = vmatpush3.bf16.msra.mxu0 %v3563_v11 }
 0x5c0   : > { %3160 = vmatprep.subr.bf16.mxu0 %v3564_v12 }
 0x5c3   : > { %3161 = vmatpush3.bf16.msra.mxu0 %v3564_v12 }
 0x5c4   : > { %3162 = vmatprep.subr.bf16.mxu0 %v3565_v28 }
 0x5c7   : > { %3163 = vmatpush3.bf16.msra.mxu0 %v3565_v28 }
 0x5c8   : > { %3164 = vmatprep.subr.bf16.mxu0 %v3566_v29 }
 0x5cb   : > { %3165 = vmatpush3.bf16.msra.mxu0 %v3566_v29 }
 0x5cc   : > { %3166 = vmatprep.subr.bf16.mxu0 %v3567_v30 }
 0x5cf   : > { %3167 = vmatpush3.bf16.msra.mxu0 %v3567_v30 }
 0x5d0   : > { %3168 = vmatprep.subr.bf16.mxu0 %v3568_v31 }
 0x5d3   : > { %3169 = vmatpush3.bf16.msra.mxu0 %v3568_v31 }
 0x5d4   : > { %3170 = vmatprep.subr.bf16.mxu0 %v3569_v32 }
 0x5d7   : > { %3171 = vmatpush3.bf16.msra.mxu0 %v3569_v32 }
 0x5d8   : > { %3172 = vmatprep.subr.bf16.mxu0 %v3570_v33 }
 0x5db   : > { %3173 = vmatpush3.bf16.msra.mxu0 %v3570_v33 }
 0x67e   : > { %v3136_v13 = vpop.f32.mrf.mxu0 }
 0x67f   : > { %v2264_v19 = vadd.f32 %v3136_v13, %v2172_v14 }
 0x680   : > { %v2255_v15 = vpop.f32.mrf.mxu0 }
 0x681   : > { %v2256_v16 = vadd.f32 %v2255_v15, %v2172_v14 }
 0x682   : > { %v3137_v17 = vpop.f32.mrf.mxu0 }
 0x683   : > { %v2267_v18 = vadd.f32 %v3137_v17, %v2172_v14  ;;  %3667 = vtanh.f32 %v2256_v16 }
 0x684   : > { %v2258_v20 = vpop.f32.mrf.mxu0 }
 0x685   : > { %v2259_v21 = vadd.f32 %v2258_v20, %v2172_v14  ;;  %3669 = vtanh.f32 %v2267_v18 }
 0x687   : > { %3671 = vtanh.f32 %v2259_v21 }
 0x688   : > { %3673 = vtanh.f32 %v2264_v19 }
 0x690   : > { %v3668_v22 = vpop.eup %3667 }
 0x692   : > { %v3670_v23 = vpop.eup %3669 }
 0x694   : > { %v3672_v24 = vpop.eup %3671 }
 0x695   : > { %v3674_v25 = vpop.eup %3673  ;;  %v2274_v26 = vpack.c.bf16 %v3672_v24, %v3668_v22 }
 0x696   : > { %v2275_v27 = vpack.c.bf16 %v3670_v23, %v3674_v25 }
 0x697   : > { %3154 = vmatprep.mubr.bf16.mxu1 %v2274_v26 }
 0x698   : > { %3155 = vmatmul.mubr.bf16.vlgmr.msra.gmra.mxu1 %v2275_v27 }
 0x699   : > { %3179 = vmatpush3.bf16.msra.mxu1 %v3571_v34 }
 0x69a   : > { %3180 = vmatprep.subr.bf16.mxu1 %v3572_v35 }
 0x69d   : > { %3181 = vmatpush3.bf16.msra.mxu1 %v3572_v35 }
 0x69e   : > { %3182 = vmatprep.subr.bf16.mxu1 %v3573_v51 }
 0x6a1   : > { %3183 = vmatpush3.bf16.msra.mxu1 %v3573_v51 }
 0x6a2   : > { %3184 = vmatprep.subr.bf16.mxu1 %v3574_v52 }
 0x6a5   : > { %3185 = vmatpush3.bf16.msra.mxu1 %v3574_v52 }
 0x6a6   : > { %3186 = vmatprep.subr.bf16.mxu1 %v3575_v53 }
 0x6a9   : > { %3187 = vmatpush3.bf16.msra.mxu1 %v3575_v53 }
 0x6aa   : > { %3188 = vmatprep.subr.bf16.mxu1 %v3576_v54 }
 0x6ad   : > { %3189 = vmatpush3.bf16.msra.mxu1 %v3576_v54 }
 0x6ae   : > { %3190 = vmatprep.subr.bf16.mxu1 %v3577_v55 }
 0x6b1   : > { %3191 = vmatpush3.bf16.msra.mxu1 %v3577_v55 }
 0x6b2   : > { %3192 = vmatprep.subr.bf16.mxu1 %v3578_v1 }
 0x6b5   : > { %3193 = vmatpush3.bf16.msra.mxu1 %v3578_v1 }
 0x758   : > { %v3156_v36 = vpop.f32.mrf.mxu1 }
 0x759   : > { %v2384_v42 = vadd.f32 %v3156_v36, %v2292_v37 }
 0x75a   : > { %v2375_v38 = vpop.f32.mrf.mxu1 }
 0x75b   : > { %v2376_v39 = vadd.f32 %v2375_v38, %v2292_v37 }
 0x75c   : > { %v3157_v40 = vpop.f32.mrf.mxu1 }
 0x75d   : > { %v2387_v41 = vadd.f32 %v3157_v40, %v2292_v37  ;;  %3675 = vtanh.f32 %v2376_v39 }
 0x75e   : > { %v2378_v43 = vpop.f32.mrf.mxu1 }
 0x75f   : > { %v2379_v44 = vadd.f32 %v2378_v43, %v2292_v37  ;;  %3677 = vtanh.f32 %v2387_v41 }
 0x761   : > { %3679 = vtanh.f32 %v2379_v44 }
 0x762   : > { %3681 = vtanh.f32 %v2384_v42 }
 0x76a   : > { %v3676_v45 = vpop.eup %3675 }
 0x76c   : > { %v3678_v46 = vpop.eup %3677 }
 0x76e   : > { %v3680_v47 = vpop.eup %3679 }
 0x76f   : > { %v3682_v48 = vpop.eup %3681  ;;  %v2394_v49 = vpack.c.bf16 %v3680_v47, %v3676_v45 }
 0x770   : > { %v2395_v50 = vpack.c.bf16 %v3678_v46, %v3682_v48 }
 0x771   : > { %3174 = vmatprep.mubr.bf16.mxu0 %v2394_v49 }
 0x772   : > { %3175 = vmatmul.mubr.bf16.vlgmr.msra.gmra.mxu0 %v2395_v50 }
 0x832   : > { %v3176_v56 = vpop.f32.mrf.mxu0 }
 0x833   : > { %v2504_v62 = vadd.f32 %v3176_v56, %v2412_v57 }
 0x834   : > { %v2495_v58 = vpop.f32.mrf.mxu0 }
 0x835   : > { %v2496_v59 = vadd.f32 %v2495_v58, %v2412_v57 }
 0x836   : > { %v3177_v60 = vpop.f32.mrf.mxu0 }
 0x837   : > { %v2507_v61 = vadd.f32 %v3177_v60, %v2412_v57  ;;  %3683 = vtanh.f32 %v2496_v59 }
 0x838   : > { %v2498_v63 = vpop.f32.mrf.mxu0 }
 0x839   : > { %v2499_v0 = vadd.f32 %v2498_v63, %v2412_v57  ;;  %3685 = vtanh.f32 %v2507_v61 }
 0x83b   : > { %3687 = vtanh.f32 %v2499_v0 }
 0x83c   : > { %3689 = vtanh.f32 %v2504_v62 }
 0x844   : > { %v3684_v3 = vpop.eup %3683 }
 0x846   : > { %v3686_v5 = vpop.eup %3685 }
 0x848   : > { %v3688_v6 = vpop.eup %3687 }
 0x849   : > { %v3690_v7 = vpop.eup %3689  ;;  %v2514_v8 = vpack.c.bf16 %v3688_v6, %v3684_v3 }
 0x84a   : > { %v2515_v9 = vpack.c.bf16 %v3686_v5, %v3690_v7 }
 0x84b   : > { %3194 = vmatprep.mubr.bf16.mxu1 %v2514_v8 }
 0x84c   : > { %3195 = vmatmul.mubr.bf16.vlgmr.msra.gmra.mxu1 %v2515_v9 }
 0x90c   : > { %v3196_v2 = vpop.f32.mrf.mxu1 }
 0x90d   : > { %v2624_v15 = vadd.f32 %v3196_v2, %v2532_v10 }
 0x90e   : > { %v2615_v4 = vpop.f32.mrf.mxu1 }
 0x90f   : > { %v2616_v11 = vadd.f32 %v2615_v4, %v2532_v10  ;;  %2633 = vst.msk [vmem:[%s546_s15 + $0x10] sm:$0xff] %vm2630_vm1, %v2624_v15 }
 0x910   : > { %v3197_v12 = vpop.f32.mrf.mxu1 }
 0x911   : > { %2631 = vst.msk [vmem:[%s546_s15] sm:$0xff] %vm2630_vm1, %v2616_v11  ;;  %v2627_v16 = vadd.f32 %v3197_v12, %v2532_v10 }
 0x912   : > { %v2618_v13 = vpop.f32.mrf.mxu1 }
 0x913   : > { %v2619_v14 = vadd.f32 %v2618_v13, %v2532_v10  ;;  %2634 = vst.msk [vmem:[%s546_s15 + $0x18] sm:$0xff] %vm2630_vm1, %v2627_v16 }
 0x915   : > { %2632 = vst.msk [vmem:[%s546_s15 + $0x8] sm:$0xff] %vm2630_vm1, %v2619_v14 }
 0x916 PF: > { %s27_s21 = sadd.s32 1, %s3951_s21  }
 0x917   : > { %p24_p6 = scmp.ge.s32.totalorder %s27_s21, 4  }
 0x919   :  { %26 = sbr.rel (!%p24_p6) target bundleno = 5 (0x5), region = 138 }
 0x91e   :  { %2657 = vsyncpa [#allocation3], 1 }
 0x91f   :  { %2659 = vsyncpa [#allocation3 + $0x1], 1 }
 0x920   :  { %2660 = vsyncpa [#allocation5], 1 }
 0x921   :  { %2661 = vsyncpa [#allocation8], 1 }
 0x922   :  { %2662 = vsyncpa [#allocation11], 1 }
 0x923   :  { %2663 = vsyncpa [#allocation14], 1 }

</bundles_post_ra>
